<compile_context>
chip_gen: v6e
topology: v6e:2x2x1
jax: 0.10.0
libtpu: 0.0.40
codegen_flags: <defaults>
</compile_context>

<pallas_src>
import numpy as np

import jax
import jax.numpy as jnp
from jax import lax
from jax.experimental import pallas as pl
from jax.experimental.pallas import tpu as pltpu


# ----------------------------------------------------------------------------
# Parameter packing helpers: stack many small matrices/vectors as rows of one
# fixed-width buffer; record (row, nrows, ncols) so the kernel can take static
# zero-cost slices.
# ----------------------------------------------------------------------------
def _pack_rows(mats, width):
    rows, offs, r = [], {}, 0
    for name, m in mats:
        m = jnp.asarray(m, jnp.float32)
        if m.ndim == 1:
            m = m[None, :]
        nr, nc = m.shape
        if nc < width:
            m = jnp.pad(m, ((0, 0), (0, width - nc)))
        offs[name] = (r, nr, nc)
        rows.append(m)
        r += nr
    return jnp.concatenate(rows, axis=0), offs


# ----------------------------------------------------------------------------
# Kernel builder.  All shape / layout constants are Python ints closed over, so
# every parameter view below is a static slice of the two packed buffers.
# Gate-column layout of every 3E (=6H) axis: [r_f | r_b | z_f | z_b | n_f | n_b].
# ----------------------------------------------------------------------------
def build_kernel(B, C, T, H, OUT, offs_g, offs_h):
    E = 2 * H          # embed dim (bidirectional)
    G = 3 * E          # fused gate axis
    N = B * C          # flattened (batch * channel) rows

    def kernel(x_ref, pg_ref, ph_ref, out_ref, xp_ref):
        # -------- static views into the packed parameter buffers -------------
        def gv(name):                       # GRU/attention buffer (full 3E width)
            r, nr, _ = offs_g[name]
            return pg_ref[r:r + nr, :]

        def hv(name):                       # head buffer, true (unpadded) width
            r, nr, nc = offs_h[name]
            return ph_ref[r:r + nr, :nc]

        # -------- hoisted input projection (input_size == 1) ------------------
        # xp[t] = x_fwd[t] * W_i_fwd + x_bwd[t] * W_i_bwd + b_i  (all gates/dirs)
        wif = gv("wif").reshape(1, 1, G)
        wib = gv("wib").reshape(1, 1, G)
        bi = gv("bi").reshape(1, 1, G)
        xp_ref[...] = x_ref[0] * wif + x_ref[1] * wib + bi

        # Hoisted weights (~12 vregs); no spill pressure at these sizes.  If a
        # bundle dump ever shows spills in the unrolled loop, read from pg_ref
        # inside step() instead.
        wh = gv("wh")                       # (E, 3E), block-diagonal per direction
        bh = gv("bh")                       # (1, 3E)

        # -------- fused bidirectional GRU: ONE MXU op per timestep ------------
        def step(t, h):                     # h: (N, E) = [h_fwd | h_bwd]
            xp_t = xp_ref[t]                                        # (N, 3E)
            hp = jnp.dot(h, wh, preferred_element_type=jnp.float32) + bh
            rz = jax.nn.sigmoid(xp_t[:, :2 * E] + hp[:, :2 * E])    # (N, 2E)
            r = rz[:, :E]
            z = rz[:, E:]
            n = jnp.tanh(xp_t[:, 2 * E:] + r * hp[:, 2 * E:])
            return (1.0 - z) * n + z * h

        h = lax.fori_loop(0, T, step, jnp.zeros((N, E), jnp.float32),
                          unroll=True)
        # h == cat(out[:, -1, :H], out[:, 0, H:]) of the torch module (rows=B*C)

        # -------- pooling / block-mask matrices generated in-kernel -----------
        rb = lax.broadcasted_iota(jnp.int32, (B, N), 0)     # batch index
        cn = lax.broadcasted_iota(jnp.int32, (B, N), 1)     # flat row index
        member = jnp.where((cn >= rb * C) & (cn < (rb + 1) * C), 1.0, 0.0)
        rbT = lax.broadcasted_iota(jnp.int32, (N, B), 1)
        cnT = lax.broadcasted_iota(jnp.int32, (N, B), 0)
        memberT = jnp.where((cnT >= rbT * C) & (cnT < (rbT + 1) * C), 1.0, 0.0)
        # same[i, j] = 1 iff rows i and j belong to the same batch element.
        same = jnp.dot(memberT, member, preferred_element_type=jnp.float32)

        # -------- single-head self-attention over channels ---------------------
        scale = 1.0 / (float(E) ** 0.5)     # num_heads = 1 -> head_dim = E
        qkv = jnp.dot(h, gv("wqkv"), preferred_element_type=jnp.float32) + gv("bqkv")
        q = qkv[:, :E] * scale
        k = qkv[:, E:2 * E]
        v = qkv[:, 2 * E:]
        s = lax.dot_general(q, k, (((1,), (1,)), ((), ())),
                            preferred_element_type=jnp.float32)     # (N, N)
        s = s + (same - 1.0) * 1e9          # forbid cross-batch attention
        s = s - jnp.max(s, axis=-1, keepdims=True)
        e = jnp.exp(s)
        p = e * pl.reciprocal(jnp.sum(e, axis=-1, keepdims=True), approx=True)
        a = jnp.dot(p, v, preferred_element_type=jnp.float32)        # (N, E)

        # mean over channels (linear -> commutes with out_proj), then out_proj
        m = jnp.dot(member * (1.0 / C), a, preferred_element_type=jnp.float32)
        m = jnp.dot(m, hv("wo"), preferred_element_type=jnp.float32) + hv("bo")

        # -------- batched FC head, single full store ----------------------------
        h1 = jnp.dot(m, hv("w1"), preferred_element_type=jnp.float32) + hv("b1")
        h2 = jnp.dot(h1, hv("w2"), preferred_element_type=jnp.float32) + hv("b2")
        out_ref[...] = (jnp.dot(h2, hv("w3"), preferred_element_type=jnp.float32)
                        + hv("b3"))

    return kernel


# ----------------------------------------------------------------------------
# Wrapper factory: layout plumbing only (time-major transpose + reversal), one
# gridless pallas_call (footprint ~0.5 MiB, far below VMEM on every generation).
# ----------------------------------------------------------------------------
def make_forward(B, C, T, H, OUT, offs_g, offs_h):
    E = 2 * H
    N = B * C
    kernel = build_kernel(B, C, T, H, OUT, offs_g, offs_h)
    vmem = pl.BlockSpec(memory_space=pltpu.MemorySpace.VMEM)

    @jax.jit
    def forward(x, pg, ph):
        xt = jnp.transpose(x.reshape(N, T)).astype(jnp.float32)     # (T, N)
        xs = jnp.stack([xt, xt[::-1]], axis=0)[..., None]            # (2, T, N, 1)
        return pl.pallas_call(
            kernel,
            out_shape=jax.ShapeDtypeStruct((B, OUT), jnp.float32),
            in_specs=[vmem, vmem, vmem],
            out_specs=vmem,
            scratch_shapes=[pltpu.VMEM((T, N, 3 * E), jnp.float32)],
        )(xs, pg, ph)

    return forward


# ----------------------------------------------------------------------------
# Parameter packing: torch-layout params -> two packed fused-layout buffers.
# ----------------------------------------------------------------------------
def pack_params(p):
    H = p["w_hh_f"].shape[1]
    E = 2 * H
    OUT = p["fc3_w"].shape[0]

    def gate(w, g):
        return w[g * H:(g + 1) * H]

    zeros_h = jnp.zeros((H,), jnp.float32)
    wif_cols, wib_cols, bi_cols, bh_cols, wh_blocks = [], [], [], [], []
    for g in range(3):                                  # torch gate order r, z, n
        wif_cols += [gate(p["w_ih_f"], g)[:, 0], zeros_h]
        wib_cols += [zeros_h, gate(p["w_ih_b"], g)[:, 0]]
        bi_cols += [gate(p["b_ih_f"], g), gate(p["b_ih_b"], g)]
        bh_cols += [gate(p["b_hh_f"], g), gate(p["b_hh_b"], g)]
        blk = jnp.zeros((E, E), jnp.float32)
        blk = blk.at[:H, :H].set(gate(p["w_hh_f"], g).T)    # block-diag per direction
        blk = blk.at[H:, H:].set(gate(p["w_hh_b"], g).T)
        wh_blocks.append(blk)

    G = 3 * E
    pg, offs_g = _pack_rows([
        ("wh",   jnp.concatenate(wh_blocks, axis=1)),        # (E, 3E)
        ("wqkv", p["in_proj_w"].T),                          # (E, 3E) cols q|k|v
        ("wif",  jnp.concatenate(wif_cols)),
        ("wib",  jnp.concatenate(wib_cols)),
        ("bi",   jnp.concatenate(bi_cols)),
        ("bh",   jnp.concatenate(bh_cols)),
        ("bqkv", p["in_proj_b"]),
    ], G)

    width_h = max(E, p["fc1_w"].shape[0], p["fc2_w"].shape[0], OUT)
    ph, offs_h = _pack_rows([
        ("wo", p["out_proj_w"].T), ("w1", p["fc1_w"].T),
        ("w2", p["fc2_w"].T),      ("w3", p["fc3_w"].T),
        ("bo", p["out_proj_b"]),   ("b1", p["fc1_b"]),
        ("b2", p["fc2_b"]),        ("b3", p["fc3_b"]),
    ], width_h)

    return pg, ph, offs_g, offs_h, H, OUT


# ----------------------------------------------------------------------------
# Pure-JAX reference with torch-layout parameters (independent of the packing).
# ----------------------------------------------------------------------------
def reference(x, p):
    B, C, T = x.shape
    N = B * C
    H = p["w_hh_f"].shape[1]
    E = 2 * H
    x_td = x.reshape(N, T).T.astype(jnp.float32)            # (T, N)

    def gru_dir(w_ih, w_hh, b_ih, b_hh, seq):
        def cell(h, x_t):
            x_t = x_t[:, None]
            r = jax.nn.sigmoid(x_t @ w_ih[:H].T + b_ih[:H] + h @ w_hh[:H].T + b_hh[:H])
            z = jax.nn.sigmoid(x_t @ w_ih[H:2 * H].T + b_ih[H:2 * H]
                               + h @ w_hh[H:2 * H].T + b_hh[H:2 * H])
            n = jnp.tanh(x_t @ w_ih[2 * H:].T + b_ih[2 * H:]
                         + r * (h @ w_hh[2 * H:].T + b_hh[2 * H:]))
            return (1.0 - z) * n + z * h, None
        h, _ = lax.scan(cell, jnp.zeros((N, H), jnp.float32), seq)
        return h

    h_f = gru_dir(p["w_ih_f"], p["w_hh_f"], p["b_ih_f"], p["b_hh_f"], x_td)
    h_b = gru_dir(p["w_ih_b"], p["w_hh_b"], p["b_ih_b"], p["b_hh_b"], x_td[::-1])
    y = jnp.concatenate([h_f, h_b], axis=1).reshape(B, C, E)

    q = y @ p["in_proj_w"][:E].T + p["in_proj_b"][:E]
    k = y @ p["in_proj_w"][E:2 * E].T + p["in_proj_b"][E:2 * E]
    v = y @ p["in_proj_w"][2 * E:].T + p["in_proj_b"][2 * E:]
    s = jnp.einsum("bqe,bke->bqk", q, k) / jnp.sqrt(jnp.float32(E))
    a = jnp.einsum("bqk,bke->bqe", jax.nn.softmax(s, axis=-1), v)
    a = a @ p["out_proj_w"].T + p["out_proj_b"]
    m = a.mean(axis=1)
    h1 = m @ p["fc1_w"].T + p["fc1_b"]
    h2 = h1 @ p["fc2_w"].T + p["fc2_b"]
    return h2 @ p["fc3_w"].T + p["fc3_b"]


# ----------------------------------------------------------------------------
# Deterministic synthetic parameters (torch layout / shapes).
# ----------------------------------------------------------------------------
def make_params(key, hidden_size, output_size):
    H = hidden_size
    E = 2 * H
    ks = jax.random.split(key, 20)
    rnd = lambda k, shape: 0.1 * jax.random.normal(k, shape, jnp.float32)
    p = dict(
        w_ih_f=rnd(ks[0], (3 * H, 1)), w_hh_f=rnd(ks[1], (3 * H, H)),
        b_ih_f=rnd(ks[2], (3 * H,)), b_hh_f=rnd(ks[3], (3 * H,)),
        w_ih_b=rnd(ks[4], (3 * H, 1)), w_hh_b=rnd(ks[5], (3 * H, H)),
        b_ih_b=rnd(ks[6], (3 * H,)), b_hh_b=rnd(ks[7], (3 * H,)),
        in_proj_w=rnd(ks[8], (3 * E, E)), in_proj_b=rnd(ks[9], (3 * E,)),
        out_proj_w=rnd(ks[10], (E, E)), out_proj_b=rnd(ks[11], (E,)),
        fc1_w=rnd(ks[12], (128, E)), fc1_b=rnd(ks[13], (128,)),
        fc2_w=rnd(ks[14], (64, 128)), fc2_b=rnd(ks[15], (64,)),
        fc3_w=rnd(ks[16], (output_size, 64)), fc3_b=rnd(ks[17], (output_size,)),
    )
    return p, ks[18]


if __name__ == "__main__":
    B, C, T = 2, 4, 16          # batch, num_channels, sequence_length
    HIDDEN, OUT = 32, 3

    raw, kx = make_params(jax.random.PRNGKey(0), HIDDEN, OUT)
    pg, ph, offs_g, offs_h, H, out_dim = pack_params(raw)
    x = jax.random.normal(kx, (B, C, T), jnp.float32)

    fwd = make_forward(B, C, T, HIDDEN, OUT, offs_g, offs_h)
    out = jax.block_until_ready(fwd(x, pg, ph))
    assert out.shape == (B, OUT), out.shape

    # Reference at full f32 matmul precision (scoped, not global).
    with jax.default_matmul_precision("highest"):
        ref = jax.block_until_ready(reference(x, raw))

    # Tolerance covers the kernel's default-precision (single-MXU-pass) matmuls
    # accumulated over the 16 recurrent steps plus the approx softmax reciprocal.
    np.testing.assert_allclose(np.asarray(out), np.asarray(ref),
                               rtol=2e-2, atol=2e-2)

    print("KERNEL_OK")
</pallas_src>

<mosaic_0001>
module attributes {stable_mosaic.version = 11 : i64} {
  func.func @kernel(%arg0: memref<2x16x8x1xf32, #tpu.memory_space<vmem>>, %arg1: memref<133x192xf32, #tpu.memory_space<vmem>>, %arg2: memref<324x128xf32, #tpu.memory_space<vmem>>, %arg3: memref<2x3xf32, #tpu.memory_space<vmem>>, %arg4: memref<16x8x192xf32, #tpu.memory_space<vmem>>) attributes {dimension_semantics = [], scalar_prefetch = 0 : i64, scratch_operands = 1 : i64, tpu.core_type = #tpu.core_type<tc>} {
    %c128 = arith.constant 128 : index
    %c0 = arith.constant 0 : index
    %0 = vector.load %arg1[%c128, %c0] : memref<133x192xf32, #tpu.memory_space<vmem>>, vector<1x192xf32>
    %1 = vector.shape_cast %0 : vector<1x192xf32> to vector<1x1x192xf32>
    %c129 = arith.constant 129 : index
    %c0_0 = arith.constant 0 : index
    %2 = vector.load %arg1[%c129, %c0_0] : memref<133x192xf32, #tpu.memory_space<vmem>>, vector<1x192xf32>
    %3 = vector.shape_cast %2 : vector<1x192xf32> to vector<1x1x192xf32>
    %c130 = arith.constant 130 : index
    %c0_1 = arith.constant 0 : index
    %4 = vector.load %arg1[%c130, %c0_1] : memref<133x192xf32, #tpu.memory_space<vmem>>, vector<1x192xf32>
    %5 = vector.shape_cast %4 : vector<1x192xf32> to vector<1x1x192xf32>
    %c0_2 = arith.constant 0 : index
    %c0_3 = arith.constant 0 : index
    %c0_4 = arith.constant 0 : index
    %c0_5 = arith.constant 0 : index
    %6 = vector.load %arg0[%c0_2, %c0_3, %c0_4, %c0_5] : memref<2x16x8x1xf32, #tpu.memory_space<vmem>>, vector<1x16x8x1xf32>
    %7 = vector.shape_cast %6 : vector<1x16x8x1xf32> to vector<16x8x1xf32>
    %8 = vector.broadcast %7 : vector<16x8x1xf32> to vector<16x8x192xf32>
    %9 = vector.broadcast %1 : vector<1x1x192xf32> to vector<16x8x192xf32>
    %10 = arith.mulf %8, %9 : vector<16x8x192xf32>
    %c1 = arith.constant 1 : index
    %c0_6 = arith.constant 0 : index
    %c0_7 = arith.constant 0 : index
    %c0_8 = arith.constant 0 : index
    %11 = vector.load %arg0[%c1, %c0_6, %c0_7, %c0_8] : memref<2x16x8x1xf32, #tpu.memory_space<vmem>>, vector<1x16x8x1xf32>
    %12 = vector.shape_cast %11 : vector<1x16x8x1xf32> to vector<16x8x1xf32>
    %13 = vector.broadcast %12 : vector<16x8x1xf32> to vector<16x8x192xf32>
    %14 = vector.broadcast %3 : vector<1x1x192xf32> to vector<16x8x192xf32>
    %15 = arith.mulf %13, %14 : vector<16x8x192xf32>
    %16 = arith.addf %10, %15 : vector<16x8x192xf32>
    %17 = vector.broadcast %5 : vector<1x1x192xf32> to vector<16x8x192xf32>
    %18 = arith.addf %16, %17 : vector<16x8x192xf32>
    %c0_9 = arith.constant 0 : index
    %c0_10 = arith.constant 0 : index
    %c0_11 = arith.constant 0 : index
    %19 = vector.load %arg4[%c0_9, %c0_10, %c0_11] : memref<16x8x192xf32, #tpu.memory_space<vmem>>, vector<16x8x192xf32>
    tpu.vector_store %arg4[%c0_9, %c0_10, %c0_11], %18 {strides = array<i32>} : memref<16x8x192xf32, #tpu.memory_space<vmem>>, vector<16x8x192xf32>,
    %c0_12 = arith.constant 0 : index
    %c0_13 = arith.constant 0 : index
    %20 = vector.load %arg1[%c0_12, %c0_13] : memref<133x192xf32, #tpu.memory_space<vmem>>, vector<64x192xf32>
    %c131 = arith.constant 131 : index
    %c0_14 = arith.constant 0 : index
    %21 = vector.load %arg1[%c131, %c0_14] : memref<133x192xf32, #tpu.memory_space<vmem>>, vector<1x192xf32>
    %cst = arith.constant 0.000000e+00 : f32
    %22 = vector.broadcast %cst : f32 to vector<8x64xf32>
    %c0_i32 = arith.constant 0 : i32
    %23 = arith.index_cast %c0_i32 : i32 to index
    %c0_15 = arith.constant 0 : index
    %c0_16 = arith.constant 0 : index
    %24 = vector.load %arg4[%23, %c0_15, %c0_16] : memref<16x8x192xf32, #tpu.memory_space<vmem>>, vector<1x8x192xf32>
    %25 = vector.shape_cast %24 : vector<1x8x192xf32> to vector<8x192xf32>
    %cst_17 = arith.constant dense<0.000000e+00> : vector<8x192xf32>
    %26 = tpu.matmul %22, %20, %cst_17 {dimension_numbers = #tpu.dot_dimension_numbers<[1], [0], [0], [1], [0, 0, 1, 1], [], []>} : vector<8x64xf32>, vector<64x192xf32>, vector<8x192xf32> -> vector<8x192xf32>
    %27 = vector.broadcast %21 : vector<1x192xf32> to vector<8x192xf32>
    %28 = arith.addf %26, %27 : vector<8x192xf32>
    %29 = vector.extract_strided_slice %25 {offsets = [0, 0], sizes = [8, 128], strides = [1, 1]} : vector<8x192xf32> to vector<8x128xf32>
    %30 = vector.extract_strided_slice %28 {offsets = [0, 0], sizes = [8, 128], strides = [1, 1]} : vector<8x192xf32> to vector<8x128xf32>
    %31 = arith.addf %29, %30 : vector<8x128xf32>
    %32 = arith.negf %31 : vector<8x128xf32>
    %33 = math.exp %32 : vector<8x128xf32>
    %cst_18 = arith.constant 1.000000e+00 : f32
    %34 = vector.broadcast %cst_18 : f32 to vector<8x128xf32>
    %35 = arith.addf %34, %33 : vector<8x128xf32>
    %36 = arith.divf %34, %35 : vector<8x128xf32>
    %37 = vector.extract_strided_slice %36 {offsets = [0, 0], sizes = [8, 64], strides = [1, 1]} : vector<8x128xf32> to vector<8x64xf32>
    %38 = vector.extract_strided_slice %36 {offsets = [0, 64], sizes = [8, 64], strides = [1, 1]} : vector<8x128xf32> to vector<8x64xf32>
    %39 = vector.extract_strided_slice %25 {offsets = [0, 128], sizes = [8, 64], strides = [1, 1]} : vector<8x192xf32> to vector<8x64xf32>
    %40 = vector.extract_strided_slice %28 {offsets = [0, 128], sizes = [8, 64], strides = [1, 1]} : vector<8x192xf32> to vector<8x64xf32>
    %41 = arith.mulf %37, %40 : vector<8x64xf32>
    %42 = arith.addf %39, %41 : vector<8x64xf32>
    %43 = math.tanh %42 : vector<8x64xf32>
    %cst_19 = arith.constant 1.000000e+00 : f32
    %44 = vector.broadcast %cst_19 : f32 to vector<8x64xf32>
    %45 = arith.subf %44, %38 : vector<8x64xf32>
    %46 = arith.mulf %45, %43 : vector<8x64xf32>
    %47 = arith.mulf %38, %22 : vector<8x64xf32>
    %48 = arith.addf %46, %47 : vector<8x64xf32>
    %c1_i32 = arith.constant 1 : i32
    %49 = arith.index_cast %c1_i32 : i32 to index
    %c0_20 = arith.constant 0 : index
    %c0_21 = arith.constant 0 : index
    %50 = vector.load %arg4[%49, %c0_20, %c0_21] : memref<16x8x192xf32, #tpu.memory_space<vmem>>, vector<1x8x192xf32>
    %51 = vector.shape_cast %50 : vector<1x8x192xf32> to vector<8x192xf32>
    %cst_22 = arith.constant dense<0.000000e+00> : vector<8x192xf32>
    %52 = tpu.matmul %48, %20, %cst_22 {dimension_numbers = #tpu.dot_dimension_numbers<[1], [0], [0], [1], [0, 0, 1, 1], [], []>} : vector<8x64xf32>, vector<64x192xf32>, vector<8x192xf32> -> vector<8x192xf32>
    %53 = vector.broadcast %21 : vector<1x192xf32> to vector<8x192xf32>
    %54 = arith.addf %52, %53 : vector<8x192xf32>
    %55 = vector.extract_strided_slice %51 {offsets = [0, 0], sizes = [8, 128], strides = [1, 1]} : vector<8x192xf32> to vector<8x128xf32>
    %56 = vector.extract_strided_slice %54 {offsets = [0, 0], sizes = [8, 128], strides = [1, 1]} : vector<8x192xf32> to vector<8x128xf32>
    %57 = arith.addf %55, %56 : vector<8x128xf32>
    %58 = arith.negf %57 : vector<8x128xf32>
    %59 = math.exp %58 : vector<8x128xf32>
    %cst_23 = arith.constant 1.000000e+00 : f32
    %60 = vector.broadcast %cst_23 : f32 to vector<8x128xf32>
    %61 = arith.addf %60, %59 : vector<8x128xf32>
    %62 = arith.divf %60, %61 : vector<8x128xf32>
    %63 = vector.extract_strided_slice %62 {offsets = [0, 0], sizes = [8, 64], strides = [1, 1]} : vector<8x128xf32> to vector<8x64xf32>
    %64 = vector.extract_strided_slice %62 {offsets = [0, 64], sizes = [8, 64], strides = [1, 1]} : vector<8x128xf32> to vector<8x64xf32>
    %65 = vector.extract_strided_slice %51 {offsets = [0, 128], sizes = [8, 64], strides = [1, 1]} : vector<8x192xf32> to vector<8x64xf32>
    %66 = vector.extract_strided_slice %54 {offsets = [0, 128], sizes = [8, 64], strides = [1, 1]} : vector<8x192xf32> to vector<8x64xf32>
    %67 = arith.mulf %63, %66 : vector<8x64xf32>
    %68 = arith.addf %65, %67 : vector<8x64xf32>
    %69 = math.tanh %68 : vector<8x64xf32>
    %cst_24 = arith.constant 1.000000e+00 : f32
    %70 = vector.broadcast %cst_24 : f32 to vector<8x64xf32>
    %71 = arith.subf %70, %64 : vector<8x64xf32>
    %72 = arith.mulf %71, %69 : vector<8x64xf32>
    %73 = arith.mulf %64, %48 : vector<8x64xf32>
    %74 = arith.addf %72, %73 : vector<8x64xf32>
    %c2_i32 = arith.constant 2 : i32
    %75 = arith.index_cast %c2_i32 : i32 to index
    %c0_25 = arith.constant 0 : index
    %c0_26 = arith.constant 0 : index
    %76 = vector.load %arg4[%75, %c0_25, %c0_26] : memref<16x8x192xf32, #tpu.memory_space<vmem>>, vector<1x8x192xf32>
    %77 = vector.shape_cast %76 : vector<1x8x192xf32> to vector<8x192xf32>
    %cst_27 = arith.constant dense<0.000000e+00> : vector<8x192xf32>
    %78 = tpu.matmul %74, %20, %cst_27 {dimension_numbers = #tpu.dot_dimension_numbers<[1], [0], [0], [1], [0, 0, 1, 1], [], []>} : vector<8x64xf32>, vector<64x192xf32>, vector<8x192xf32> -> vector<8x192xf32>
    %79 = vector.broadcast %21 : vector<1x192xf32> to vector<8x192xf32>
    %80 = arith.addf %78, %79 : vector<8x192xf32>
    %81 = vector.extract_strided_slice %77 {offsets = [0, 0], sizes = [8, 128], strides = [1, 1]} : vector<8x192xf32> to vector<8x128xf32>
    %82 = vector.extract_strided_slice %80 {offsets = [0, 0], sizes = [8, 128], strides = [1, 1]} : vector<8x192xf32> to vector<8x128xf32>
    %83 = arith.addf %81, %82 : vector<8x128xf32>
    %84 = arith.negf %83 : vector<8x128xf32>
    %85 = math.exp %84 : vector<8x128xf32>
    %cst_28 = arith.constant 1.000000e+00 : f32
    %86 = vector.broadcast %cst_28 : f32 to vector<8x128xf32>
    %87 = arith.addf %86, %85 : vector<8x128xf32>
    %88 = arith.divf %86, %87 : vector<8x128xf32>
    %89 = vector.extract_strided_slice %88 {offsets = [0, 0], sizes = [8, 64], strides = [1, 1]} : vector<8x128xf32> to vector<8x64xf32>
    %90 = vector.extract_strided_slice %88 {offsets = [0, 64], sizes = [8, 64], strides = [1, 1]} : vector<8x128xf32> to vector<8x64xf32>
    %91 = vector.extract_strided_slice %77 {offsets = [0, 128], sizes = [8, 64], strides = [1, 1]} : vector<8x192xf32> to vector<8x64xf32>
    %92 = vector.extract_strided_slice %80 {offsets = [0, 128], sizes = [8, 64], strides = [1, 1]} : vector<8x192xf32> to vector<8x64xf32>
    %93 = arith.mulf %89, %92 : vector<8x64xf32>
    %94 = arith.addf %91, %93 : vector<8x64xf32>
    %95 = math.tanh %94 : vector<8x64xf32>
    %cst_29 = arith.constant 1.000000e+00 : f32
    %96 = vector.broadcast %cst_29 : f32 to vector<8x64xf32>
    %97 = arith.subf %96, %90 : vector<8x64xf32>
    %98 = arith.mulf %97, %95 : vector<8x64xf32>
    %99 = arith.mulf %90, %74 : vector<8x64xf32>
    %100 = arith.addf %98, %99 : vector<8x64xf32>
    %c3_i32 = arith.constant 3 : i32
    %101 = arith.index_cast %c3_i32 : i32 to index
    %c0_30 = arith.constant 0 : index
    %c0_31 = arith.constant 0 : index
    %102 = vector.load %arg4[%101, %c0_30, %c0_31] : memref<16x8x192xf32, #tpu.memory_space<vmem>>, vector<1x8x192xf32>
    %103 = vector.shape_cast %102 : vector<1x8x192xf32> to vector<8x192xf32>
    %cst_32 = arith.constant dense<0.000000e+00> : vector<8x192xf32>
    %104 = tpu.matmul %100, %20, %cst_32 {dimension_numbers = #tpu.dot_dimension_numbers<[1], [0], [0], [1], [0, 0, 1, 1], [], []>} : vector<8x64xf32>, vector<64x192xf32>, vector<8x192xf32> -> vector<8x192xf32>
    %105 = vector.broadcast %21 : vector<1x192xf32> to vector<8x192xf32>
    %106 = arith.addf %104, %105 : vector<8x192xf32>
    %107 = vector.extract_strided_slice %103 {offsets = [0, 0], sizes = [8, 128], strides = [1, 1]} : vector<8x192xf32> to vector<8x128xf32>
    %108 = vector.extract_strided_slice %106 {offsets = [0, 0], sizes = [8, 128], strides = [1, 1]} : vector<8x192xf32> to vector<8x128xf32>
    %109 = arith.addf %107, %108 : vector<8x128xf32>
    %110 = arith.negf %109 : vector<8x128xf32>
    %111 = math.exp %110 : vector<8x128xf32>
    %cst_33 = arith.constant 1.000000e+00 : f32
    %112 = vector.broadcast %cst_33 : f32 to vector<8x128xf32>
    %113 = arith.addf %112, %111 : vector<8x128xf32>
    %114 = arith.divf %112, %113 : vector<8x128xf32>
    %115 = vector.extract_strided_slice %114 {offsets = [0, 0], sizes = [8, 64], strides = [1, 1]} : vector<8x128xf32> to vector<8x64xf32>
    %116 = vector.extract_strided_slice %114 {offsets = [0, 64], sizes = [8, 64], strides = [1, 1]} : vector<8x128xf32> to vector<8x64xf32>
    %117 = vector.extract_strided_slice %103 {offsets = [0, 128], sizes = [8, 64], strides = [1, 1]} : vector<8x192xf32> to vector<8x64xf32>
    %118 = vector.extract_strided_slice %106 {offsets = [0, 128], sizes = [8, 64], strides = [1, 1]} : vector<8x192xf32> to vector<8x64xf32>
    %119 = arith.mulf %115, %118 : vector<8x64xf32>
    %120 = arith.addf %117, %119 : vector<8x64xf32>
    %121 = math.tanh %120 : vector<8x64xf32>
    %cst_34 = arith.constant 1.000000e+00 : f32
    %122 = vector.broadcast %cst_34 : f32 to vector<8x64xf32>
    %123 = arith.subf %122, %116 : vector<8x64xf32>
    %124 = arith.mulf %123, %121 : vector<8x64xf32>
    %125 = arith.mulf %116, %100 : vector<8x64xf32>
    %126 = arith.addf %124, %125 : vector<8x64xf32>
    %c4_i32 = arith.constant 4 : i32
    %127 = arith.index_cast %c4_i32 : i32 to index
    %c0_35 = arith.constant 0 : index
    %c0_36 = arith.constant 0 : index
    %128 = vector.load %arg4[%127, %c0_35, %c0_36] : memref<16x8x192xf32, #tpu.memory_space<vmem>>, vector<1x8x192xf32>
    %129 = vector.shape_cast %128 : vector<1x8x192xf32> to vector<8x192xf32>
    %cst_37 = arith.constant dense<0.000000e+00> : vector<8x192xf32>
    %130 = tpu.matmul %126, %20, %cst_37 {dimension_numbers = #tpu.dot_dimension_numbers<[1], [0], [0], [1], [0, 0, 1, 1], [], []>} : vector<8x64xf32>, vector<64x192xf32>, vector<8x192xf32> -> vector<8x192xf32>
    %131 = vector.broadcast %21 : vector<1x192xf32> to vector<8x192xf32>
    %132 = arith.addf %130, %131 : vector<8x192xf32>
    %133 = vector.extract_strided_slice %129 {offsets = [0, 0], sizes = [8, 128], strides = [1, 1]} : vector<8x192xf32> to vector<8x128xf32>
    %134 = vector.extract_strided_slice %132 {offsets = [0, 0], sizes = [8, 128], strides = [1, 1]} : vector<8x192xf32> to vector<8x128xf32>
    %135 = arith.addf %133, %134 : vector<8x128xf32>
    %136 = arith.negf %135 : vector<8x128xf32>
    %137 = math.exp %136 : vector<8x128xf32>
    %cst_38 = arith.constant 1.000000e+00 : f32
    %138 = vector.broadcast %cst_38 : f32 to vector<8x128xf32>
    %139 = arith.addf %138, %137 : vector<8x128xf32>
    %140 = arith.divf %138, %139 : vector<8x128xf32>
    %141 = vector.extract_strided_slice %140 {offsets = [0, 0], sizes = [8, 64], strides = [1, 1]} : vector<8x128xf32> to vector<8x64xf32>
    %142 = vector.extract_strided_slice %140 {offsets = [0, 64], sizes = [8, 64], strides = [1, 1]} : vector<8x128xf32> to vector<8x64xf32>
    %143 = vector.extract_strided_slice %129 {offsets = [0, 128], sizes = [8, 64], strides = [1, 1]} : vector<8x192xf32> to vector<8x64xf32>
    %144 = vector.extract_strided_slice %132 {offsets = [0, 128], sizes = [8, 64], strides = [1, 1]} : vector<8x192xf32> to vector<8x64xf32>
    %145 = arith.mulf %141, %144 : vector<8x64xf32>
    %146 = arith.addf %143, %145 : vector<8x64xf32>
    %147 = math.tanh %146 : vector<8x64xf32>
    %cst_39 = arith.constant 1.000000e+00 : f32
    %148 = vector.broadcast %cst_39 : f32 to vector<8x64xf32>
    %149 = arith.subf %148, %142 : vector<8x64xf32>
    %150 = arith.mulf %149, %147 : vector<8x64xf32>
    %151 = arith.mulf %142, %126 : vector<8x64xf32>
    %152 = arith.addf %150, %151 : vector<8x64xf32>
    %c5_i32 = arith.constant 5 : i32
    %153 = arith.index_cast %c5_i32 : i32 to index
    %c0_40 = arith.constant 0 : index
    %c0_41 = arith.constant 0 : index
    %154 = vector.load %arg4[%153, %c0_40, %c0_41] : memref<16x8x192xf32, #tpu.memory_space<vmem>>, vector<1x8x192xf32>
    %155 = vector.shape_cast %154 : vector<1x8x192xf32> to vector<8x192xf32>
    %cst_42 = arith.constant dense<0.000000e+00> : vector<8x192xf32>
    %156 = tpu.matmul %152, %20, %cst_42 {dimension_numbers = #tpu.dot_dimension_numbers<[1], [0], [0], [1], [0, 0, 1, 1], [], []>} : vector<8x64xf32>, vector<64x192xf32>, vector<8x192xf32> -> vector<8x192xf32>
    %157 = vector.broadcast %21 : vector<1x192xf32> to vector<8x192xf32>
    %158 = arith.addf %156, %157 : vector<8x192xf32>
    %159 = vector.extract_strided_slice %155 {offsets = [0, 0], sizes = [8, 128], strides = [1, 1]} : vector<8x192xf32> to vector<8x128xf32>
    %160 = vector.extract_strided_slice %158 {offsets = [0, 0], sizes = [8, 128], strides = [1, 1]} : vector<8x192xf32> to vector<8x128xf32>
    %161 = arith.addf %159, %160 : vector<8x128xf32>
    %162 = arith.negf %161 : vector<8x128xf32>
    %163 = math.exp %162 : vector<8x128xf32>
    %cst_43 = arith.constant 1.000000e+00 : f32
    %164 = vector.broadcast %cst_43 : f32 to vector<8x128xf32>
    %165 = arith.addf %164, %163 : vector<8x128xf32>
    %166 = arith.divf %164, %165 : vector<8x128xf32>
    %167 = vector.extract_strided_slice %166 {offsets = [0, 0], sizes = [8, 64], strides = [1, 1]} : vector<8x128xf32> to vector<8x64xf32>
    %168 = vector.extract_strided_slice %166 {offsets = [0, 64], sizes = [8, 64], strides = [1, 1]} : vector<8x128xf32> to vector<8x64xf32>
    %169 = vector.extract_strided_slice %155 {offsets = [0, 128], sizes = [8, 64], strides = [1, 1]} : vector<8x192xf32> to vector<8x64xf32>
    %170 = vector.extract_strided_slice %158 {offsets = [0, 128], sizes = [8, 64], strides = [1, 1]} : vector<8x192xf32> to vector<8x64xf32>
    %171 = arith.mulf %167, %170 : vector<8x64xf32>
    %172 = arith.addf %169, %171 : vector<8x64xf32>
    %173 = math.tanh %172 : vector<8x64xf32>
    %cst_44 = arith.constant 1.000000e+00 : f32
    %174 = vector.broadcast %cst_44 : f32 to vector<8x64xf32>
    %175 = arith.subf %174, %168 : vector<8x64xf32>
    %176 = arith.mulf %175, %173 : vector<8x64xf32>
    %177 = arith.mulf %168, %152 : vector<8x64xf32>
    %178 = arith.addf %176, %177 : vector<8x64xf32>
    %c6_i32 = arith.constant 6 : i32
    %179 = arith.index_cast %c6_i32 : i32 to index
    %c0_45 = arith.constant 0 : index
    %c0_46 = arith.constant 0 : index
    %180 = vector.load %arg4[%179, %c0_45, %c0_46] : memref<16x8x192xf32, #tpu.memory_space<vmem>>, vector<1x8x192xf32>
    %181 = vector.shape_cast %180 : vector<1x8x192xf32> to vector<8x192xf32>
    %cst_47 = arith.constant dense<0.000000e+00> : vector<8x192xf32>
    %182 = tpu.matmul %178, %20, %cst_47 {dimension_numbers = #tpu.dot_dimension_numbers<[1], [0], [0], [1], [0, 0, 1, 1], [], []>} : vector<8x64xf32>, vector<64x192xf32>, vector<8x192xf32> -> vector<8x192xf32>
    %183 = vector.broadcast %21 : vector<1x192xf32> to vector<8x192xf32>
    %184 = arith.addf %182, %183 : vector<8x192xf32>
    %185 = vector.extract_strided_slice %181 {offsets = [0, 0], sizes = [8, 128], strides = [1, 1]} : vector<8x192xf32> to vector<8x128xf32>
    %186 = vector.extract_strided_slice %184 {offsets = [0, 0], sizes = [8, 128], strides = [1, 1]} : vector<8x192xf32> to vector<8x128xf32>
    %187 = arith.addf %185, %186 : vector<8x128xf32>
    %188 = arith.negf %187 : vector<8x128xf32>
    %189 = math.exp %188 : vector<8x128xf32>
    %cst_48 = arith.constant 1.000000e+00 : f32
    %190 = vector.broadcast %cst_48 : f32 to vector<8x128xf32>
    %191 = arith.addf %190, %189 : vector<8x128xf32>
    %192 = arith.divf %190, %191 : vector<8x128xf32>
    %193 = vector.extract_strided_slice %192 {offsets = [0, 0], sizes = [8, 64], strides = [1, 1]} : vector<8x128xf32> to vector<8x64xf32>
    %194 = vector.extract_strided_slice %192 {offsets = [0, 64], sizes = [8, 64], strides = [1, 1]} : vector<8x128xf32> to vector<8x64xf32>
    %195 = vector.extract_strided_slice %181 {offsets = [0, 128], sizes = [8, 64], strides = [1, 1]} : vector<8x192xf32> to vector<8x64xf32>
    %196 = vector.extract_strided_slice %184 {offsets = [0, 128], sizes = [8, 64], strides = [1, 1]} : vector<8x192xf32> to vector<8x64xf32>
    %197 = arith.mulf %193, %196 : vector<8x64xf32>
    %198 = arith.addf %195, %197 : vector<8x64xf32>
    %199 = math.tanh %198 : vector<8x64xf32>
    %cst_49 = arith.constant 1.000000e+00 : f32
    %200 = vector.broadcast %cst_49 : f32 to vector<8x64xf32>
    %201 = arith.subf %200, %194 : vector<8x64xf32>
    %202 = arith.mulf %201, %199 : vector<8x64xf32>
    %203 = arith.mulf %194, %178 : vector<8x64xf32>
    %204 = arith.addf %202, %203 : vector<8x64xf32>
    %c7_i32 = arith.constant 7 : i32
    %205 = arith.index_cast %c7_i32 : i32 to index
    %c0_50 = arith.constant 0 : index
    %c0_51 = arith.constant 0 : index
    %206 = vector.load %arg4[%205, %c0_50, %c0_51] : memref<16x8x192xf32, #tpu.memory_space<vmem>>, vector<1x8x192xf32>
    %207 = vector.shape_cast %206 : vector<1x8x192xf32> to vector<8x192xf32>
    %cst_52 = arith.constant dense<0.000000e+00> : vector<8x192xf32>
    %208 = tpu.matmul %204, %20, %cst_52 {dimension_numbers = #tpu.dot_dimension_numbers<[1], [0], [0], [1], [0, 0, 1, 1], [], []>} : vector<8x64xf32>, vector<64x192xf32>, vector<8x192xf32> -> vector<8x192xf32>
    %209 = vector.broadcast %21 : vector<1x192xf32> to vector<8x192xf32>
    %210 = arith.addf %208, %209 : vector<8x192xf32>
    %211 = vector.extract_strided_slice %207 {offsets = [0, 0], sizes = [8, 128], strides = [1, 1]} : vector<8x192xf32> to vector<8x128xf32>
    %212 = vector.extract_strided_slice %210 {offsets = [0, 0], sizes = [8, 128], strides = [1, 1]} : vector<8x192xf32> to vector<8x128xf32>
    %213 = arith.addf %211, %212 : vector<8x128xf32>
    %214 = arith.negf %213 : vector<8x128xf32>
    %215 = math.exp %214 : vector<8x128xf32>
    %cst_53 = arith.constant 1.000000e+00 : f32
    %216 = vector.broadcast %cst_53 : f32 to vector<8x128xf32>
    %217 = arith.addf %216, %215 : vector<8x128xf32>
    %218 = arith.divf %216, %217 : vector<8x128xf32>
    %219 = vector.extract_strided_slice %218 {offsets = [0, 0], sizes = [8, 64], strides = [1, 1]} : vector<8x128xf32> to vector<8x64xf32>
    %220 = vector.extract_strided_slice %218 {offsets = [0, 64], sizes = [8, 64], strides = [1, 1]} : vector<8x128xf32> to vector<8x64xf32>
    %221 = vector.extract_strided_slice %207 {offsets = [0, 128], sizes = [8, 64], strides = [1, 1]} : vector<8x192xf32> to vector<8x64xf32>
    %222 = vector.extract_strided_slice %210 {offsets = [0, 128], sizes = [8, 64], strides = [1, 1]} : vector<8x192xf32> to vector<8x64xf32>
    %223 = arith.mulf %219, %222 : vector<8x64xf32>
    %224 = arith.addf %221, %223 : vector<8x64xf32>
    %225 = math.tanh %224 : vector<8x64xf32>
    %cst_54 = arith.constant 1.000000e+00 : f32
    %226 = vector.broadcast %cst_54 : f32 to vector<8x64xf32>
    %227 = arith.subf %226, %220 : vector<8x64xf32>
    %228 = arith.mulf %227, %225 : vector<8x64xf32>
    %229 = arith.mulf %220, %204 : vector<8x64xf32>
    %230 = arith.addf %228, %229 : vector<8x64xf32>
    %c8_i32 = arith.constant 8 : i32
    %231 = arith.index_cast %c8_i32 : i32 to index
    %c0_55 = arith.constant 0 : index
    %c0_56 = arith.constant 0 : index
    %232 = vector.load %arg4[%231, %c0_55, %c0_56] : memref<16x8x192xf32, #tpu.memory_space<vmem>>, vector<1x8x192xf32>
    %233 = vector.shape_cast %232 : vector<1x8x192xf32> to vector<8x192xf32>
    %cst_57 = arith.constant dense<0.000000e+00> : vector<8x192xf32>
    %234 = tpu.matmul %230, %20, %cst_57 {dimension_numbers = #tpu.dot_dimension_numbers<[1], [0], [0], [1], [0, 0, 1, 1], [], []>} : vector<8x64xf32>, vector<64x192xf32>, vector<8x192xf32> -> vector<8x192xf32>
    %235 = vector.broadcast %21 : vector<1x192xf32> to vector<8x192xf32>
    %236 = arith.addf %234, %235 : vector<8x192xf32>
    %237 = vector.extract_strided_slice %233 {offsets = [0, 0], sizes = [8, 128], strides = [1, 1]} : vector<8x192xf32> to vector<8x128xf32>
    %238 = vector.extract_strided_slice %236 {offsets = [0, 0], sizes = [8, 128], strides = [1, 1]} : vector<8x192xf32> to vector<8x128xf32>
    %239 = arith.addf %237, %238 : vector<8x128xf32>
    %240 = arith.negf %239 : vector<8x128xf32>
    %241 = math.exp %240 : vector<8x128xf32>
    %cst_58 = arith.constant 1.000000e+00 : f32
    %242 = vector.broadcast %cst_58 : f32 to vector<8x128xf32>
    %243 = arith.addf %242, %241 : vector<8x128xf32>
    %244 = arith.divf %242, %243 : vector<8x128xf32>
    %245 = vector.extract_strided_slice %244 {offsets = [0, 0], sizes = [8, 64], strides = [1, 1]} : vector<8x128xf32> to vector<8x64xf32>
    %246 = vector.extract_strided_slice %244 {offsets = [0, 64], sizes = [8, 64], strides = [1, 1]} : vector<8x128xf32> to vector<8x64xf32>
    %247 = vector.extract_strided_slice %233 {offsets = [0, 128], sizes = [8, 64], strides = [1, 1]} : vector<8x192xf32> to vector<8x64xf32>
    %248 = vector.extract_strided_slice %236 {offsets = [0, 128], sizes = [8, 64], strides = [1, 1]} : vector<8x192xf32> to vector<8x64xf32>
    %249 = arith.mulf %245, %248 : vector<8x64xf32>
    %250 = arith.addf %247, %249 : vector<8x64xf32>
    %251 = math.tanh %250 : vector<8x64xf32>
    %cst_59 = arith.constant 1.000000e+00 : f32
    %252 = vector.broadcast %cst_59 : f32 to vector<8x64xf32>
    %253 = arith.subf %252, %246 : vector<8x64xf32>
    %254 = arith.mulf %253, %251 : vector<8x64xf32>
    %255 = arith.mulf %246, %230 : vector<8x64xf32>
    %256 = arith.addf %254, %255 : vector<8x64xf32>
    %c9_i32 = arith.constant 9 : i32
    %257 = arith.index_cast %c9_i32 : i32 to index
    %c0_60 = arith.constant 0 : index
    %c0_61 = arith.constant 0 : index
    %258 = vector.load %arg4[%257, %c0_60, %c0_61] : memref<16x8x192xf32, #tpu.memory_space<vmem>>, vector<1x8x192xf32>
    %259 = vector.shape_cast %258 : vector<1x8x192xf32> to vector<8x192xf32>
    %cst_62 = arith.constant dense<0.000000e+00> : vector<8x192xf32>
    %260 = tpu.matmul %256, %20, %cst_62 {dimension_numbers = #tpu.dot_dimension_numbers<[1], [0], [0], [1], [0, 0, 1, 1], [], []>} : vector<8x64xf32>, vector<64x192xf32>, vector<8x192xf32> -> vector<8x192xf32>
    %261 = vector.broadcast %21 : vector<1x192xf32> to vector<8x192xf32>
    %262 = arith.addf %260, %261 : vector<8x192xf32>
    %263 = vector.extract_strided_slice %259 {offsets = [0, 0], sizes = [8, 128], strides = [1, 1]} : vector<8x192xf32> to vector<8x128xf32>
    %264 = vector.extract_strided_slice %262 {offsets = [0, 0], sizes = [8, 128], strides = [1, 1]} : vector<8x192xf32> to vector<8x128xf32>
    %265 = arith.addf %263, %264 : vector<8x128xf32>
    %266 = arith.negf %265 : vector<8x128xf32>
    %267 = math.exp %266 : vector<8x128xf32>
    %cst_63 = arith.constant 1.000000e+00 : f32
    %268 = vector.broadcast %cst_63 : f32 to vector<8x128xf32>
    %269 = arith.addf %268, %267 : vector<8x128xf32>
    %270 = arith.divf %268, %269 : vector<8x128xf32>
    %271 = vector.extract_strided_slice %270 {offsets = [0, 0], sizes = [8, 64], strides = [1, 1]} : vector<8x128xf32> to vector<8x64xf32>
    %272 = vector.extract_strided_slice %270 {offsets = [0, 64], sizes = [8, 64], strides = [1, 1]} : vector<8x128xf32> to vector<8x64xf32>
    %273 = vector.extract_strided_slice %259 {offsets = [0, 128], sizes = [8, 64], strides = [1, 1]} : vector<8x192xf32> to vector<8x64xf32>
    %274 = vector.extract_strided_slice %262 {offsets = [0, 128], sizes = [8, 64], strides = [1, 1]} : vector<8x192xf32> to vector<8x64xf32>
    %275 = arith.mulf %271, %274 : vector<8x64xf32>
    %276 = arith.addf %273, %275 : vector<8x64xf32>
    %277 = math.tanh %276 : vector<8x64xf32>
    %cst_64 = arith.constant 1.000000e+00 : f32
    %278 = vector.broadcast %cst_64 : f32 to vector<8x64xf32>
    %279 = arith.subf %278, %272 : vector<8x64xf32>
    %280 = arith.mulf %279, %277 : vector<8x64xf32>
    %281 = arith.mulf %272, %256 : vector<8x64xf32>
    %282 = arith.addf %280, %281 : vector<8x64xf32>
    %c10_i32 = arith.constant 10 : i32
    %283 = arith.index_cast %c10_i32 : i32 to index
    %c0_65 = arith.constant 0 : index
    %c0_66 = arith.constant 0 : index
    %284 = vector.load %arg4[%283, %c0_65, %c0_66] : memref<16x8x192xf32, #tpu.memory_space<vmem>>, vector<1x8x192xf32>
    %285 = vector.shape_cast %284 : vector<1x8x192xf32> to vector<8x192xf32>
    %cst_67 = arith.constant dense<0.000000e+00> : vector<8x192xf32>
    %286 = tpu.matmul %282, %20, %cst_67 {dimension_numbers = #tpu.dot_dimension_numbers<[1], [0], [0], [1], [0, 0, 1, 1], [], []>} : vector<8x64xf32>, vector<64x192xf32>, vector<8x192xf32> -> vector<8x192xf32>
    %287 = vector.broadcast %21 : vector<1x192xf32> to vector<8x192xf32>
    %288 = arith.addf %286, %287 : vector<8x192xf32>
    %289 = vector.extract_strided_slice %285 {offsets = [0, 0], sizes = [8, 128], strides = [1, 1]} : vector<8x192xf32> to vector<8x128xf32>
    %290 = vector.extract_strided_slice %288 {offsets = [0, 0], sizes = [8, 128], strides = [1, 1]} : vector<8x192xf32> to vector<8x128xf32>
    %291 = arith.addf %289, %290 : vector<8x128xf32>
    %292 = arith.negf %291 : vector<8x128xf32>
    %293 = math.exp %292 : vector<8x128xf32>
    %cst_68 = arith.constant 1.000000e+00 : f32
    %294 = vector.broadcast %cst_68 : f32 to vector<8x128xf32>
    %295 = arith.addf %294, %293 : vector<8x128xf32>
    %296 = arith.divf %294, %295 : vector<8x128xf32>
    %297 = vector.extract_strided_slice %296 {offsets = [0, 0], sizes = [8, 64], strides = [1, 1]} : vector<8x128xf32> to vector<8x64xf32>
    %298 = vector.extract_strided_slice %296 {offsets = [0, 64], sizes = [8, 64], strides = [1, 1]} : vector<8x128xf32> to vector<8x64xf32>
    %299 = vector.extract_strided_slice %285 {offsets = [0, 128], sizes = [8, 64], strides = [1, 1]} : vector<8x192xf32> to vector<8x64xf32>
    %300 = vector.extract_strided_slice %288 {offsets = [0, 128], sizes = [8, 64], strides = [1, 1]} : vector<8x192xf32> to vector<8x64xf32>
    %301 = arith.mulf %297, %300 : vector<8x64xf32>
    %302 = arith.addf %299, %301 : vector<8x64xf32>
    %303 = math.tanh %302 : vector<8x64xf32>
    %cst_69 = arith.constant 1.000000e+00 : f32
    %304 = vector.broadcast %cst_69 : f32 to vector<8x64xf32>
    %305 = arith.subf %304, %298 : vector<8x64xf32>
    %306 = arith.mulf %305, %303 : vector<8x64xf32>
    %307 = arith.mulf %298, %282 : vector<8x64xf32>
    %308 = arith.addf %306, %307 : vector<8x64xf32>
    %c11_i32 = arith.constant 11 : i32
    %309 = arith.index_cast %c11_i32 : i32 to index
    %c0_70 = arith.constant 0 : index
    %c0_71 = arith.constant 0 : index
    %310 = vector.load %arg4[%309, %c0_70, %c0_71] : memref<16x8x192xf32, #tpu.memory_space<vmem>>, vector<1x8x192xf32>
    %311 = vector.shape_cast %310 : vector<1x8x192xf32> to vector<8x192xf32>
    %cst_72 = arith.constant dense<0.000000e+00> : vector<8x192xf32>
    %312 = tpu.matmul %308, %20, %cst_72 {dimension_numbers = #tpu.dot_dimension_numbers<[1], [0], [0], [1], [0, 0, 1, 1], [], []>} : vector<8x64xf32>, vector<64x192xf32>, vector<8x192xf32> -> vector<8x192xf32>
    %313 = vector.broadcast %21 : vector<1x192xf32> to vector<8x192xf32>
    %314 = arith.addf %312, %313 : vector<8x192xf32>
    %315 = vector.extract_strided_slice %311 {offsets = [0, 0], sizes = [8, 128], strides = [1, 1]} : vector<8x192xf32> to vector<8x128xf32>
    %316 = vector.extract_strided_slice %314 {offsets = [0, 0], sizes = [8, 128], strides = [1, 1]} : vector<8x192xf32> to vector<8x128xf32>
    %317 = arith.addf %315, %316 : vector<8x128xf32>
    %318 = arith.negf %317 : vector<8x128xf32>
    %319 = math.exp %318 : vector<8x128xf32>
    %cst_73 = arith.constant 1.000000e+00 : f32
    %320 = vector.broadcast %cst_73 : f32 to vector<8x128xf32>
    %321 = arith.addf %320, %319 : vector<8x128xf32>
    %322 = arith.divf %320, %321 : vector<8x128xf32>
    %323 = vector.extract_strided_slice %322 {offsets = [0, 0], sizes = [8, 64], strides = [1, 1]} : vector<8x128xf32> to vector<8x64xf32>
    %324 = vector.extract_strided_slice %322 {offsets = [0, 64], sizes = [8, 64], strides = [1, 1]} : vector<8x128xf32> to vector<8x64xf32>
    %325 = vector.extract_strided_slice %311 {offsets = [0, 128], sizes = [8, 64], strides = [1, 1]} : vector<8x192xf32> to vector<8x64xf32>
    %326 = vector.extract_strided_slice %314 {offsets = [0, 128], sizes = [8, 64], strides = [1, 1]} : vector<8x192xf32> to vector<8x64xf32>
    %327 = arith.mulf %323, %326 : vector<8x64xf32>
    %328 = arith.addf %325, %327 : vector<8x64xf32>
    %329 = math.tanh %328 : vector<8x64xf32>
    %cst_74 = arith.constant 1.000000e+00 : f32
    %330 = vector.broadcast %cst_74 : f32 to vector<8x64xf32>
    %331 = arith.subf %330, %324 : vector<8x64xf32>
    %332 = arith.mulf %331, %329 : vector<8x64xf32>
    %333 = arith.mulf %324, %308 : vector<8x64xf32>
    %334 = arith.addf %332, %333 : vector<8x64xf32>
    %c12_i32 = arith.constant 12 : i32
    %335 = arith.index_cast %c12_i32 : i32 to index
    %c0_75 = arith.constant 0 : index
    %c0_76 = arith.constant 0 : index
    %336 = vector.load %arg4[%335, %c0_75, %c0_76] : memref<16x8x192xf32, #tpu.memory_space<vmem>>, vector<1x8x192xf32>
    %337 = vector.shape_cast %336 : vector<1x8x192xf32> to vector<8x192xf32>
    %cst_77 = arith.constant dense<0.000000e+00> : vector<8x192xf32>
    %338 = tpu.matmul %334, %20, %cst_77 {dimension_numbers = #tpu.dot_dimension_numbers<[1], [0], [0], [1], [0, 0, 1, 1], [], []>} : vector<8x64xf32>, vector<64x192xf32>, vector<8x192xf32> -> vector<8x192xf32>
    %339 = vector.broadcast %21 : vector<1x192xf32> to vector<8x192xf32>
    %340 = arith.addf %338, %339 : vector<8x192xf32>
    %341 = vector.extract_strided_slice %337 {offsets = [0, 0], sizes = [8, 128], strides = [1, 1]} : vector<8x192xf32> to vector<8x128xf32>
    %342 = vector.extract_strided_slice %340 {offsets = [0, 0], sizes = [8, 128], strides = [1, 1]} : vector<8x192xf32> to vector<8x128xf32>
    %343 = arith.addf %341, %342 : vector<8x128xf32>
    %344 = arith.negf %343 : vector<8x128xf32>
    %345 = math.exp %344 : vector<8x128xf32>
    %cst_78 = arith.constant 1.000000e+00 : f32
    %346 = vector.broadcast %cst_78 : f32 to vector<8x128xf32>
    %347 = arith.addf %346, %345 : vector<8x128xf32>
    %348 = arith.divf %346, %347 : vector<8x128xf32>
    %349 = vector.extract_strided_slice %348 {offsets = [0, 0], sizes = [8, 64], strides = [1, 1]} : vector<8x128xf32> to vector<8x64xf32>
    %350 = vector.extract_strided_slice %348 {offsets = [0, 64], sizes = [8, 64], strides = [1, 1]} : vector<8x128xf32> to vector<8x64xf32>
    %351 = vector.extract_strided_slice %337 {offsets = [0, 128], sizes = [8, 64], strides = [1, 1]} : vector<8x192xf32> to vector<8x64xf32>
    %352 = vector.extract_strided_slice %340 {offsets = [0, 128], sizes = [8, 64], strides = [1, 1]} : vector<8x192xf32> to vector<8x64xf32>
    %353 = arith.mulf %349, %352 : vector<8x64xf32>
    %354 = arith.addf %351, %353 : vector<8x64xf32>
    %355 = math.tanh %354 : vector<8x64xf32>
    %cst_79 = arith.constant 1.000000e+00 : f32
    %356 = vector.broadcast %cst_79 : f32 to vector<8x64xf32>
    %357 = arith.subf %356, %350 : vector<8x64xf32>
    %358 = arith.mulf %357, %355 : vector<8x64xf32>
    %359 = arith.mulf %350, %334 : vector<8x64xf32>
    %360 = arith.addf %358, %359 : vector<8x64xf32>
    %c13_i32 = arith.constant 13 : i32
    %361 = arith.index_cast %c13_i32 : i32 to index
    %c0_80 = arith.constant 0 : index
    %c0_81 = arith.constant 0 : index
    %362 = vector.load %arg4[%361, %c0_80, %c0_81] : memref<16x8x192xf32, #tpu.memory_space<vmem>>, vector<1x8x192xf32>
    %363 = vector.shape_cast %362 : vector<1x8x192xf32> to vector<8x192xf32>
    %cst_82 = arith.constant dense<0.000000e+00> : vector<8x192xf32>
    %364 = tpu.matmul %360, %20, %cst_82 {dimension_numbers = #tpu.dot_dimension_numbers<[1], [0], [0], [1], [0, 0, 1, 1], [], []>} : vector<8x64xf32>, vector<64x192xf32>, vector<8x192xf32> -> vector<8x192xf32>
    %365 = vector.broadcast %21 : vector<1x192xf32> to vector<8x192xf32>
    %366 = arith.addf %364, %365 : vector<8x192xf32>
    %367 = vector.extract_strided_slice %363 {offsets = [0, 0], sizes = [8, 128], strides = [1, 1]} : vector<8x192xf32> to vector<8x128xf32>
    %368 = vector.extract_strided_slice %366 {offsets = [0, 0], sizes = [8, 128], strides = [1, 1]} : vector<8x192xf32> to vector<8x128xf32>
    %369 = arith.addf %367, %368 : vector<8x128xf32>
    %370 = arith.negf %369 : vector<8x128xf32>
    %371 = math.exp %370 : vector<8x128xf32>
    %cst_83 = arith.constant 1.000000e+00 : f32
    %372 = vector.broadcast %cst_83 : f32 to vector<8x128xf32>
    %373 = arith.addf %372, %371 : vector<8x128xf32>
    %374 = arith.divf %372, %373 : vector<8x128xf32>
    %375 = vector.extract_strided_slice %374 {offsets = [0, 0], sizes = [8, 64], strides = [1, 1]} : vector<8x128xf32> to vector<8x64xf32>
    %376 = vector.extract_strided_slice %374 {offsets = [0, 64], sizes = [8, 64], strides = [1, 1]} : vector<8x128xf32> to vector<8x64xf32>
    %377 = vector.extract_strided_slice %363 {offsets = [0, 128], sizes = [8, 64], strides = [1, 1]} : vector<8x192xf32> to vector<8x64xf32>
    %378 = vector.extract_strided_slice %366 {offsets = [0, 128], sizes = [8, 64], strides = [1, 1]} : vector<8x192xf32> to vector<8x64xf32>
    %379 = arith.mulf %375, %378 : vector<8x64xf32>
    %380 = arith.addf %377, %379 : vector<8x64xf32>
    %381 = math.tanh %380 : vector<8x64xf32>
    %cst_84 = arith.constant 1.000000e+00 : f32
    %382 = vector.broadcast %cst_84 : f32 to vector<8x64xf32>
    %383 = arith.subf %382, %376 : vector<8x64xf32>
    %384 = arith.mulf %383, %381 : vector<8x64xf32>
    %385 = arith.mulf %376, %360 : vector<8x64xf32>
    %386 = arith.addf %384, %385 : vector<8x64xf32>
    %c14_i32 = arith.constant 14 : i32
    %387 = arith.index_cast %c14_i32 : i32 to index
    %c0_85 = arith.constant 0 : index
    %c0_86 = arith.constant 0 : index
    %388 = vector.load %arg4[%387, %c0_85, %c0_86] : memref<16x8x192xf32, #tpu.memory_space<vmem>>, vector<1x8x192xf32>
    %389 = vector.shape_cast %388 : vector<1x8x192xf32> to vector<8x192xf32>
    %cst_87 = arith.constant dense<0.000000e+00> : vector<8x192xf32>
    %390 = tpu.matmul %386, %20, %cst_87 {dimension_numbers = #tpu.dot_dimension_numbers<[1], [0], [0], [1], [0, 0, 1, 1], [], []>} : vector<8x64xf32>, vector<64x192xf32>, vector<8x192xf32> -> vector<8x192xf32>
    %391 = vector.broadcast %21 : vector<1x192xf32> to vector<8x192xf32>
    %392 = arith.addf %390, %391 : vector<8x192xf32>
    %393 = vector.extract_strided_slice %389 {offsets = [0, 0], sizes = [8, 128], strides = [1, 1]} : vector<8x192xf32> to vector<8x128xf32>
    %394 = vector.extract_strided_slice %392 {offsets = [0, 0], sizes = [8, 128], strides = [1, 1]} : vector<8x192xf32> to vector<8x128xf32>
    %395 = arith.addf %393, %394 : vector<8x128xf32>
    %396 = arith.negf %395 : vector<8x128xf32>
    %397 = math.exp %396 : vector<8x128xf32>
    %cst_88 = arith.constant 1.000000e+00 : f32
    %398 = vector.broadcast %cst_88 : f32 to vector<8x128xf32>
    %399 = arith.addf %398, %397 : vector<8x128xf32>
    %400 = arith.divf %398, %399 : vector<8x128xf32>
    %401 = vector.extract_strided_slice %400 {offsets = [0, 0], sizes = [8, 64], strides = [1, 1]} : vector<8x128xf32> to vector<8x64xf32>
    %402 = vector.extract_strided_slice %400 {offsets = [0, 64], sizes = [8, 64], strides = [1, 1]} : vector<8x128xf32> to vector<8x64xf32>
    %403 = vector.extract_strided_slice %389 {offsets = [0, 128], sizes = [8, 64], strides = [1, 1]} : vector<8x192xf32> to vector<8x64xf32>
    %404 = vector.extract_strided_slice %392 {offsets = [0, 128], sizes = [8, 64], strides = [1, 1]} : vector<8x192xf32> to vector<8x64xf32>
    %405 = arith.mulf %401, %404 : vector<8x64xf32>
    %406 = arith.addf %403, %405 : vector<8x64xf32>
    %407 = math.tanh %406 : vector<8x64xf32>
    %cst_89 = arith.constant 1.000000e+00 : f32
    %408 = vector.broadcast %cst_89 : f32 to vector<8x64xf32>
    %409 = arith.subf %408, %402 : vector<8x64xf32>
    %410 = arith.mulf %409, %407 : vector<8x64xf32>
    %411 = arith.mulf %402, %386 : vector<8x64xf32>
    %412 = arith.addf %410, %411 : vector<8x64xf32>
    %c15_i32 = arith.constant 15 : i32
    %413 = arith.index_cast %c15_i32 : i32 to index
    %c0_90 = arith.constant 0 : index
    %c0_91 = arith.constant 0 : index
    %414 = vector.load %arg4[%413, %c0_90, %c0_91] : memref<16x8x192xf32, #tpu.memory_space<vmem>>, vector<1x8x192xf32>
    %415 = vector.shape_cast %414 : vector<1x8x192xf32> to vector<8x192xf32>
    %cst_92 = arith.constant dense<0.000000e+00> : vector<8x192xf32>
    %416 = tpu.matmul %412, %20, %cst_92 {dimension_numbers = #tpu.dot_dimension_numbers<[1], [0], [0], [1], [0, 0, 1, 1], [], []>} : vector<8x64xf32>, vector<64x192xf32>, vector<8x192xf32> -> vector<8x192xf32>
    %417 = vector.broadcast %21 : vector<1x192xf32> to vector<8x192xf32>
    %418 = arith.addf %416, %417 : vector<8x192xf32>
    %419 = vector.extract_strided_slice %415 {offsets = [0, 0], sizes = [8, 128], strides = [1, 1]} : vector<8x192xf32> to vector<8x128xf32>
    %420 = vector.extract_strided_slice %418 {offsets = [0, 0], sizes = [8, 128], strides = [1, 1]} : vector<8x192xf32> to vector<8x128xf32>
    %421 = arith.addf %419, %420 : vector<8x128xf32>
    %422 = arith.negf %421 : vector<8x128xf32>
    %423 = math.exp %422 : vector<8x128xf32>
    %cst_93 = arith.constant 1.000000e+00 : f32
    %424 = vector.broadcast %cst_93 : f32 to vector<8x128xf32>
    %425 = arith.addf %424, %423 : vector<8x128xf32>
    %426 = arith.divf %424, %425 : vector<8x128xf32>
    %427 = vector.extract_strided_slice %426 {offsets = [0, 0], sizes = [8, 64], strides = [1, 1]} : vector<8x128xf32> to vector<8x64xf32>
    %428 = vector.extract_strided_slice %426 {offsets = [0, 64], sizes = [8, 64], strides = [1, 1]} : vector<8x128xf32> to vector<8x64xf32>
    %429 = vector.extract_strided_slice %415 {offsets = [0, 128], sizes = [8, 64], strides = [1, 1]} : vector<8x192xf32> to vector<8x64xf32>
    %430 = vector.extract_strided_slice %418 {offsets = [0, 128], sizes = [8, 64], strides = [1, 1]} : vector<8x192xf32> to vector<8x64xf32>
    %431 = arith.mulf %427, %430 : vector<8x64xf32>
    %432 = arith.addf %429, %431 : vector<8x64xf32>
    %433 = math.tanh %432 : vector<8x64xf32>
    %cst_94 = arith.constant 1.000000e+00 : f32
    %434 = vector.broadcast %cst_94 : f32 to vector<8x64xf32>
    %435 = arith.subf %434, %428 : vector<8x64xf32>
    %436 = arith.mulf %435, %433 : vector<8x64xf32>
    %437 = arith.mulf %428, %412 : vector<8x64xf32>
    %438 = arith.addf %436, %437 : vector<8x64xf32>
    %c16_i32 = arith.constant 16 : i32
    %439 = tpu.iota {dimensions = array<i32: 0>} : vector<2x8xi32>
    %440 = tpu.iota {dimensions = array<i32: 1>} : vector<2x8xi32>
    %c4_i32_95 = arith.constant 4 : i32
    %441 = vector.broadcast %c4_i32_95 : i32 to vector<2x8xi32>
    %442 = arith.muli %439, %441 : vector<2x8xi32>
    %443 = arith.cmpi sge, %440, %442 : vector<2x8xi32>
    %c1_i32_96 = arith.constant 1 : i32
    %444 = vector.broadcast %c1_i32_96 : i32 to vector<2x8xi32>
    %445 = arith.addi %439, %444 : vector<2x8xi32>
    %c4_i32_97 = arith.constant 4 : i32
    %446 = vector.broadcast %c4_i32_97 : i32 to vector<2x8xi32>
    %447 = arith.muli %445, %446 : vector<2x8xi32>
    %448 = arith.cmpi slt, %440, %447 : vector<2x8xi32>
    %449 = arith.andi %443, %448 : vector<2x8xi1>
    %cst_98 = arith.constant 1.000000e+00 : f32
    %cst_99 = arith.constant 0.000000e+00 : f32
    %450 = vector.broadcast %cst_98 : f32 to vector<2x8xf32>
    %451 = vector.broadcast %cst_99 : f32 to vector<2x8xf32>
    %452 = arith.select %449, %450, %451 : vector<2x8xi1>, vector<2x8xf32>
    %453 = tpu.iota {dimensions = array<i32: 1>} : vector<8x2xi32>
    %454 = tpu.iota {dimensions = array<i32: 0>} : vector<8x2xi32>
    %c4_i32_100 = arith.constant 4 : i32
    %455 = vector.broadcast %c4_i32_100 : i32 to vector<8x2xi32>
    %456 = arith.muli %453, %455 : vector<8x2xi32>
    %457 = arith.cmpi sge, %454, %456 : vector<8x2xi32>
    %c1_i32_101 = arith.constant 1 : i32
    %458 = vector.broadcast %c1_i32_101 : i32 to vector<8x2xi32>
    %459 = arith.addi %453, %458 : vector<8x2xi32>
    %c4_i32_102 = arith.constant 4 : i32
    %460 = vector.broadcast %c4_i32_102 : i32 to vector<8x2xi32>
    %461 = arith.muli %459, %460 : vector<8x2xi32>
    %462 = arith.cmpi slt, %454, %461 : vector<8x2xi32>
    %463 = arith.andi %457, %462 : vector<8x2xi1>
    %cst_103 = arith.constant 1.000000e+00 : f32
    %cst_104 = arith.constant 0.000000e+00 : f32
    %464 = vector.broadcast %cst_103 : f32 to vector<8x2xf32>
    %465 = vector.broadcast %cst_104 : f32 to vector<8x2xf32>
    %466 = arith.select %463, %464, %465 : vector<8x2xi1>, vector<8x2xf32>
    %cst_105 = arith.constant dense<0.000000e+00> : vector<8x8xf32>
    %467 = tpu.matmul %466, %452, %cst_105 {dimension_numbers = #tpu.dot_dimension_numbers<[1], [0], [0], [1], [0, 0, 1, 1], [], []>} : vector<8x2xf32>, vector<2x8xf32>, vector<8x8xf32> -> vector<8x8xf32>
    %c64 = arith.constant 64 : index
    %c0_106 = arith.constant 0 : index
    %468 = vector.load %arg1[%c64, %c0_106] : memref<133x192xf32, #tpu.memory_space<vmem>>, vector<64x192xf32>
    %cst_107 = arith.constant dense<0.000000e+00> : vector<8x192xf32>
    %469 = tpu.matmul %438, %468, %cst_107 {dimension_numbers = #tpu.dot_dimension_numbers<[1], [0], [0], [1], [0, 0, 1, 1], [], []>} : vector<8x64xf32>, vector<64x192xf32>, vector<8x192xf32> -> vector<8x192xf32>
    %c132 = arith.constant 132 : index
    %c0_108 = arith.constant 0 : index
    %470 = vector.load %arg1[%c132, %c0_108] : memref<133x192xf32, #tpu.memory_space<vmem>>, vector<1x192xf32>
    %471 = vector.broadcast %470 : vector<1x192xf32> to vector<8x192xf32>
    %472 = arith.addf %469, %471 : vector<8x192xf32>
    %473 = vector.extract_strided_slice %472 {offsets = [0, 0], sizes = [8, 64], strides = [1, 1]} : vector<8x192xf32> to vector<8x64xf32>
    %cst_109 = arith.constant 1.250000e-01 : f32
    %474 = vector.broadcast %cst_109 : f32 to vector<8x64xf32>
    %475 = arith.mulf %473, %474 : vector<8x64xf32>
    %476 = vector.extract_strided_slice %472 {offsets = [0, 64], sizes = [8, 64], strides = [1, 1]} : vector<8x192xf32> to vector<8x64xf32>
    %477 = vector.extract_strided_slice %472 {offsets = [0, 128], sizes = [8, 64], strides = [1, 1]} : vector<8x192xf32> to vector<8x64xf32>
    %cst_110 = arith.constant dense<0.000000e+00> : vector<8x8xf32>
    %478 = tpu.matmul %475, %476, %cst_110 {dimension_numbers = #tpu.dot_dimension_numbers<[1], [1], [0], [0], [0, 0, 1, 0], [], []>} : vector<8x64xf32>, vector<8x64xf32>, vector<8x8xf32> -> vector<8x8xf32>
    %cst_111 = arith.constant 1.000000e+00 : f32
    %479 = vector.broadcast %cst_111 : f32 to vector<8x8xf32>
    %480 = arith.subf %467, %479 : vector<8x8xf32>
    %cst_112 = arith.constant 1.000000e+09 : f32
    %481 = vector.broadcast %cst_112 : f32 to vector<8x8xf32>
    %482 = arith.mulf %480, %481 : vector<8x8xf32>
    %483 = arith.addf %478, %482 : vector<8x8xf32>
    %cst_113 = arith.constant dense<0xFF800000> : vector<8xf32>
    %484 = vector.multi_reduction <maximumf>, %483, %cst_113 [1] : vector<8x8xf32> to vector<8xf32>
    %485 = vector.shape_cast %484 : vector<8xf32> to vector<8x1xf32>
    %486 = vector.broadcast %485 : vector<8x1xf32> to vector<8x8xf32>
    %487 = arith.subf %483, %486 : vector<8x8xf32>
    %488 = math.exp %487 : vector<8x8xf32>
    %cst_114 = arith.constant dense<0.000000e+00> : vector<8xf32>
    %489 = vector.multi_reduction <add>, %488, %cst_114 [1] : vector<8x8xf32> to vector<8xf32>
    %490 = vector.shape_cast %489 : vector<8xf32> to vector<8x1xf32>
    %491 = tpu.reciprocal %490 {approx = true} : vector<8x1xf32> -> vector<8x1xf32>
    %492 = vector.broadcast %491 : vector<8x1xf32> to vector<8x8xf32>
    %493 = arith.mulf %488, %492 : vector<8x8xf32>
    %cst_115 = arith.constant dense<0.000000e+00> : vector<8x64xf32>
    %494 = tpu.matmul %493, %477, %cst_115 {dimension_numbers = #tpu.dot_dimension_numbers<[1], [0], [0], [1], [0, 0, 1, 1], [], []>} : vector<8x8xf32>, vector<8x64xf32>, vector<8x64xf32> -> vector<8x64xf32>
    %cst_116 = arith.constant 2.500000e-01 : f32
    %495 = vector.broadcast %cst_116 : f32 to vector<2x8xf32>
    %496 = arith.mulf %452, %495 : vector<2x8xf32>
    %cst_117 = arith.constant dense<0.000000e+00> : vector<2x64xf32>
    %497 = tpu.matmul %496, %494, %cst_117 {dimension_numbers = #tpu.dot_dimension_numbers<[1], [0], [0], [1], [0, 0, 1, 1], [], []>} : vector<2x8xf32>, vector<8x64xf32>, vector<2x64xf32> -> vector<2x64xf32>
    %c0_118 = arith.constant 0 : index
    %c0_119 = arith.constant 0 : index
    %498 = vector.load %arg2[%c0_118, %c0_119] : memref<324x128xf32, #tpu.memory_space<vmem>>, vector<64x64xf32>
    %cst_120 = arith.constant dense<0.000000e+00> : vector<2x64xf32>
    %499 = tpu.matmul %497, %498, %cst_120 {dimension_numbers = #tpu.dot_dimension_numbers<[1], [0], [0], [1], [0, 0, 1, 1], [], []>} : vector<2x64xf32>, vector<64x64xf32>, vector<2x64xf32> -> vector<2x64xf32>
    %c320 = arith.constant 320 : index
    %c0_121 = arith.constant 0 : index
    %500 = vector.load %arg2[%c320, %c0_121] : memref<324x128xf32, #tpu.memory_space<vmem>>, vector<1x64xf32>
    %501 = vector.broadcast %500 : vector<1x64xf32> to vector<2x64xf32>
    %502 = arith.addf %499, %501 : vector<2x64xf32>
    %c64_122 = arith.constant 64 : index
    %c0_123 = arith.constant 0 : index
    %503 = vector.load %arg2[%c64_122, %c0_123] : memref<324x128xf32, #tpu.memory_space<vmem>>, vector<64x128xf32>
    %cst_124 = arith.constant dense<0.000000e+00> : vector<2x128xf32>
    %504 = tpu.matmul %502, %503, %cst_124 {dimension_numbers = #tpu.dot_dimension_numbers<[1], [0], [0], [1], [0, 0, 1, 1], [], []>} : vector<2x64xf32>, vector<64x128xf32>, vector<2x128xf32> -> vector<2x128xf32>
    %c321 = arith.constant 321 : index
    %c0_125 = arith.constant 0 : index
    %505 = vector.load %arg2[%c321, %c0_125] : memref<324x128xf32, #tpu.memory_space<vmem>>, vector<1x128xf32>
    %506 = vector.broadcast %505 : vector<1x128xf32> to vector<2x128xf32>
    %507 = arith.addf %504, %506 : vector<2x128xf32>
    %c128_126 = arith.constant 128 : index
    %c0_127 = arith.constant 0 : index
    %508 = vector.load %arg2[%c128_126, %c0_127] : memref<324x128xf32, #tpu.memory_space<vmem>>, vector<128x64xf32>
    %cst_128 = arith.constant dense<0.000000e+00> : vector<2x64xf32>
    %509 = tpu.matmul %507, %508, %cst_128 {dimension_numbers = #tpu.dot_dimension_numbers<[1], [0], [0], [1], [0, 0, 1, 1], [], []>} : vector<2x128xf32>, vector<128x64xf32>, vector<2x64xf32> -> vector<2x64xf32>
    %c322 = arith.constant 322 : index
    %c0_129 = arith.constant 0 : index
    %510 = vector.load %arg2[%c322, %c0_129] : memref<324x128xf32, #tpu.memory_space<vmem>>, vector<1x64xf32>
    %511 = vector.broadcast %510 : vector<1x64xf32> to vector<2x64xf32>
    %512 = arith.addf %509, %511 : vector<2x64xf32>
    %c256 = arith.constant 256 : index
    %c0_130 = arith.constant 0 : index
    %513 = vector.load %arg2[%c256, %c0_130] : memref<324x128xf32, #tpu.memory_space<vmem>>, vector<64x3xf32>
    %cst_131 = arith.constant dense<0.000000e+00> : vector<2x3xf32>
    %514 = tpu.matmul %512, %513, %cst_131 {dimension_numbers = #tpu.dot_dimension_numbers<[1], [0], [0], [1], [0, 0, 1, 1], [], []>} : vector<2x64xf32>, vector<64x3xf32>, vector<2x3xf32> -> vector<2x3xf32>
    %c323 = arith.constant 323 : index
    %c0_132 = arith.constant 0 : index
    %515 = vector.load %arg2[%c323, %c0_132] : memref<324x128xf32, #tpu.memory_space<vmem>>, vector<1x3xf32>
    %516 = vector.broadcast %515 : vector<1x3xf32> to vector<2x3xf32>
    %517 = arith.addf %514, %516 : vector<2x3xf32>
    %c0_133 = arith.constant 0 : index
    %c0_134 = arith.constant 0 : index
    %518 = vector.load %arg3[%c0_133, %c0_134] : memref<2x3xf32, #tpu.memory_space<vmem>>, vector<2x3xf32>
    tpu.vector_store %arg3[%c0_133, %c0_134], %517 {strides = array<i32>} : memref<2x3xf32, #tpu.memory_space<vmem>>, vector<2x3xf32>,
    return
  }
}

</mosaic_0001>

<bundles_post_ra>
// kernel: forward.1
= control target key start
LH: loop header
LB: loop body
LE: loop exit
PB: predicated region body
PF: predicated region fallthrough
CT: control target
= control target key end

     0   :  { %8 = vsyncpa [#allocation4], 0  ;;  %s4156_s0 = inlined_call_operand.vmem [shape: f32[2,16,8,1], index: 0, kind: input, shape index: {}]   ;;  %s4157_s1 = inlined_call_operand.vmem [shape: f32[133,192], index: 1, kind: input, shape index: {}]   ;;  %s4158_s2 = inlined_call_operand.hbm [shape: f32[324,128], index: 2, kind: input, shape index: {}]   ;;  %s4159_s3 = inlined_call_operand.hbm [shape: f32[2,3], index: 3, kind: output, shape index: {}]  }
   0x1   :  { %9 = vsyncpa [#allocation5], 0  ;;  %s3208_s12 = smov [#allocation3]  }
   0x2   :  { %s19_s13 = sshll.u32 %s3208_s12, 4  ;;  %s20_s13 = int_to_ptr.vmem [resolvable:$true] %s19_s13 }
   0x3   :  { %s3172_s14 = scalar_lea.vmem %s20_s13, 5248  ;;  %p3177_p1 = scmp.lt.s32.totalorder %s20_s13, %s20_s13 }
   0x4   :  { %p3173_p0 = scmp.ne.s32.totalorder %s20_s13, %s3172_s14  ;;  %p3178_p2 = scmp.lt.s32.totalorder %s3172_s14, %s3172_s14 }
   0x6   :  { %p3179_p3 = por %p3178_p2, %p3177_p1 }
   0x8   :  { %p3180_p4 = pnand %p3179_p3, %p3173_p0 }
   0xa   :  { %3183 = shalt.err (!%p3180_p4)
}
   0xb   :  { %s3209_s15 = smov 128   ;;  %s3210_s16 = smov 8  }
   0xc   :  { %25 = dma.hbm_to_vmem [thread:$0]  %s4158_s2, 5248, %s20_s13, [#allocation4], %s3209_s15, %s3209_s15, %s3210_s16  }
   0xd   :  { %3204 = dma.done.wait [#allocation4], 5248  }
   0xe   :  { %3205 = vsyncadd [#allocation4], 4294962048  ;;  %v3211_v0 = vmov 0.0   ;;  %v3212_v1 = vmov 0   ;;  %v3244_v2 = vld [vmem:[%s4157_s1 + $0x78] sm:$0xff]  ;;  %v3249_v3 = vld [vmem:[%s4157_s1 + $0x70] sm:$0xff]  ;;  %v132_v21 = vlaneseq }
   0xf   :  { %520 = vmatprep.mubr.f32.mxu0 %v3211_v0  ;;  %3046 = vset.pattern.permute.xlu0 %v3212_v1  ;;  %v3254_v4 = vld [vmem:[%s4157_s1 + $0x68] sm:$0xff]  ;;  %v3260_v5 = vld [vmem:[%s4157_s1 + $0x60] sm:$0xff]  ;;  %v3267_v6 = vld [vmem:[%s4157_s1 + $0x58] sm:$0xff]  ;;  %vm390_vm0 = vcmask 523264   ;;  %s3213_s9 = smov 64   ;;  %vm3214_vm2 = vmmov 0  }
  0x10   :  { %3047 = vset.pattern.permute.xlu1 %v3212_v1  ;;  %617 = vmatprep.mubr.f32.mxu1 %v3211_v0  ;;  %v3274_v7 = vld [vmem:[%s4157_s1 + $0x50] sm:$0xff]  ;;  %v3281_v8 = vld [vmem:[%s4157_s1 + $0x48] sm:$0xff]  ;;  %v3288_v9 = vld [vmem:[%s4157_s1 + $0x40] sm:$0xff]  ;;  %v3383_v22 = vshrl.u32 %v132_v21, 7  ;;  %vm2022_vm4 = vcmask 1041408   ;;  %vm2018_vm8 = vcmask 15360  }
  0x11   :  { %472 = vmatprep.subr.mxu0 %v3244_v2  ;;  %569 = vmatprep.subr.mxu1 %v3244_v2  ;;  %v35_v10 = vld [vmem:[%s4156_s0] sm:$0xff]  ;;  %v3298_v11 = vld [vmem:[%s4157_s1 + $0x38] sm:$0xff]  ;;  %v3304_v12 = vld [vmem:[%s4157_s1 + $0x30] sm:$0xff]  ;;  %vm2282_vm10 = vcmask 64512   ;;  %vm2790_vm11 = vcmask 17408  }
  0x12   :  { %473 = vmatpush1.msra.mxu0 %v3249_v3  ;;  %570 = vmatpush1.msra.mxu1 %v3249_v3  ;;  %v2810_v13 = vld [vmem:[%s4156_s0 + $0x80] sm:$0xff]  ;;  %v3314_v14 = vld [vmem:[%s4157_s1 + $0x28] sm:$0xff]  ;;  %v3327_v16 = vld [vmem:[%s4157_s1 + $0x18] sm:$0xff]  ;;  %v3386_v23 = vsub.s32 0, %v3383_v22  ;;  %v3389_v24 = vsub.s32 1, %v3383_v22 }
  0x13   :  { %474 = vmatprep.subr.mxu0 %v3254_v4  ;;  %571 = vmatprep.subr.mxu1 %v3254_v4  ;;  %v3320_v15 = vld [vmem:[%s4157_s1 + $0x20] sm:$0xff]  ;;  %v3333_v17 = vld [vmem:[%s4157_s1 + $0x10] sm:$0xff]  ;;  %v36_v18 = vld [vmem:[%s4156_s0 + $0x8] sm:$0xff] }
  0x14   :  { %475 = vmatpush1.msra.mxu0 %v3260_v5  ;;  %572 = vmatpush1.msra.mxu1 %v3260_v5  ;;  %v3343_v19 = vld [vmem:[%s4157_s1 + $0x8] sm:$0xff]  ;;  %v3350_v20 = vld [vmem:[%s4157_s1] sm:$0xff] }
  0x15   :  { %476 = vmatprep.subr.mxu0 %v3267_v6  ;;  %573 = vmatprep.subr.mxu1 %v3267_v6  ;;  %v2807_v25 = vld [vmem:[%s4157_s1 + $0x100] ss:$8 sm:$0x3]  ;;  %v2808_v26 = vld [vmem:[%s4157_s1 + $0x101] ss:$8 sm:$0x3] }
  0x16   :  { %477 = vmatpush1.msra.mxu0 %v3274_v7  ;;  %53 = vperm.xlu0 %3046, %v35_v10   ;;  %v3398_v27 = vrot.slane %v2807_v25, %v3386_v23  ;;  %v3401_v28 = vrot.slane %v2807_v25, %v3389_v24  ;;  %v3404_v30 = vrot.slane %v2808_v26, %v3386_v23  ;;  %v2809_v32 = vld [vmem:[%s4157_s1 + $0x102] ss:$8 sm:$0x3]  ;;  %v2826_v44 = vld [vmem:[%s4157_s1 + $0x103] ss:$8 sm:$0x3] }
  0x17   :  { %478 = vmatprep.subr.mxu0 %v3281_v8  ;;  %574 = vmatpush1.msra.mxu1 %v3274_v7  ;;  %v3407_v31 = vrot.slane %v2808_v26, %v3389_v24  ;;  %v3417_v38 = vrot.slane %v2809_v32, %v3386_v23  ;;  %v3420_v39 = vrot.slane %v2809_v32, %v3389_v24  ;;  %v2811_v10 = vld [vmem:[%s4156_s0 + $0x88] sm:$0xff] }
  0x18   :  { %479 = vmatpush1.msra.mxu0 %v3288_v9  ;;  %575 = vmatprep.subr.mxu1 %v3281_v8  ;;  %v3429_v45 = vrot.slane %v2826_v44, %v3386_v23  ;;  %v3433_v52 = vrot.slane %v2826_v44, %v3389_v24 }
  0x19   :  { %480 = vmatprep.subr.mxu0 %v3298_v11  ;;  %576 = vmatpush1.msra.mxu1 %v3288_v9 }
  0x1a   :  { %481 = vmatpush1.msra.mxu0 %v3304_v12  ;;  %193 = vperm.xlu0 %3046, %v2810_v13  }
  0x1b   :  { %482 = vmatprep.subr.mxu0 %v3314_v14  ;;  %577 = vmatprep.subr.mxu1 %v3298_v11 }
  0x1c   :  { %483 = vmatpush1.msra.mxu0 %v3320_v15  ;;  %578 = vmatpush1.msra.mxu1 %v3304_v12 }
  0x1d   :  { %484 = vmatprep.subr.mxu0 %v3327_v16  ;;  %579 = vmatprep.subr.mxu1 %v3314_v14 }
  0x1e   :  { %485 = vmatpush1.msra.mxu0 %v3333_v17  ;;  %58 = vperm.xlu0 %3046, %v36_v18  }
  0x1f   :  { %486 = vmatprep.subr.mxu0 %v3343_v19  ;;  %580 = vmatpush1.msra.mxu1 %v3320_v15 }
  0x20   :  { %487 = vmatpush1.msra.mxu0 %v3350_v20  ;;  %581 = vmatprep.subr.mxu1 %v3327_v16 }
  0x21   :  { %521 = vmatmul.mubr.f32.vlgmr.msra.gmra.mxu0 %v3211_v0  ;;  %582 = vmatpush1.msra.mxu1 %v3333_v17 }
  0x22   :  { %666 = vmatprep.subr.mxu0 %v3244_v2  ;;  %583 = vmatprep.subr.mxu1 %v3343_v19 }
  0x23   :  { %667 = vmatpush1.msra.mxu0 %v3249_v3  ;;  %584 = vmatpush1.msra.mxu1 %v3350_v20 }
  0x24   :  { %668 = vmatprep.subr.mxu0 %v3254_v4  ;;  %714 = vmatprep.mubr.f32.mxu0 %v3211_v0 }
  0x25   :  { %669 = vmatpush1.msra.mxu0 %v3260_v5  ;;  %763 = vmatprep.subr.mxu1 %v3244_v2 }
  0x26   :  { %670 = vmatprep.subr.mxu0 %v3267_v6 }
  0x27   :  { %671 = vmatpush1.msra.mxu0 %v3274_v7 }
  0x28   :  { %672 = vmatprep.subr.mxu0 %v3281_v8 }
  0x29   :  { %673 = vmatpush1.msra.mxu0 %v3288_v9 }
  0x2a   :  { %674 = vmatprep.subr.mxu0 %v3298_v11 }
  0x2b   :  { %675 = vmatpush1.msra.mxu0 %v3304_v12 }
  0x2c   :  { %676 = vmatprep.subr.mxu0 %v3314_v14 }
  0x2d   :  { %677 = vmatpush1.msra.mxu0 %v3320_v15 }
  0x2e   :  { %678 = vmatprep.subr.mxu0 %v3327_v16 }
  0x2f   :  { %679 = vmatpush1.msra.mxu0 %v3333_v17 }
  0x30   :  { %680 = vmatprep.subr.mxu0 %v3343_v19 }
  0x31   :  { %681 = vmatpush1.msra.mxu0 %v3350_v20 }
  0x32   :  { %860 = vmatprep.subr.mxu0 %v3244_v2 }
  0x91   :  { %v54_v29 = vpop.permute.xlu0 %53 }
  0x92   :  { %v142_v33 = vmul.f32 %v3398_v27, %v54_v29  ;;  %v143_v34 = vmul.f32 %v3401_v28, %v54_v29 }
  0x95   :  { %v194_v35 = vpop.permute.xlu0 %193 }
  0x96   :  { %v282_v36 = vmul.f32 %v3404_v30, %v194_v35  ;;  %v283_v37 = vmul.f32 %v3407_v31, %v194_v35 }
  0x98   :  { %v314_v40 = vadd.f32 %v282_v36, %v142_v33  ;;  %v315_v41 = vadd.f32 %v283_v37, %v143_v34 }
  0x99   :  { %v59_v18 = vpop.permute.xlu0 %58 }
  0x9a   :  { %v357_v42 = vadd.f32 %v3417_v38, %v314_v40  ;;  %v358_v43 = vadd.f32 %v3420_v39, %v315_v41  ;;  %v144_v26 = vmul.f32 %v3398_v27, %v59_v18  ;;  %v145_v29 = vmul.f32 %v3401_v28, %v59_v18 }
  0x9c   :  { %391 = vst.msk [vmem:[#allocation2 + $0x8] sm:$0xff] %vm390_vm0, %v358_v43 }
  0xa3   :  { %v441_v57 = vld [vmem:[#allocation2 + $0x8] sm:$0xff] }
  0xe1   :  { %v522_v46 = vpop.f32.mrf.mxu0 }
  0xe2   :  { %v523_v47 = vadd.f32 %v522_v46, %v3429_v45 }
  0xe3   :  { %v524_v53 = vpop.f32.mrf.mxu0 }
  0xe4   :  { %v527_v48 = vadd.f32 %v523_v47, %v357_v42  ;;  %v525_v54 = vadd.f32 %v524_v53, %v3433_v52 }
  0xe6   :  { %v2827_v49 = vmul.f32 -1.442695, %v527_v48 }
  0xe8   :  { %3048 = vpow2.f32 %v2827_v49 }
  0xf5   :  { %v3049_v50 = vpop.eup %3048 }
  0xf6   :  { %v531_v51 = vadd.f32 1.0, %v3049_v50 }
  0xf8   :  { %3050 = vrcp.f32 %v531_v51 }
 0x105   :  { %v3051_v55 = vpop.eup %3050 }
 0x106   :  { %v534_v56 = vmul.f32 %v3051_v55, %v525_v54  ;;  %v537_v60 = vsub.f32 1.0, %v3051_v55  ;;  %v543_v62 = vmul.f32 0.0, %v3051_v55  ;;  %v37_v55 = vld [vmem:[%s4156_s0 + $0x10] sm:$0xff] }
 0x108   :  { %v535_v58 = vadd.f32 %v534_v56, %v441_v57 }
 0x10a   :  { %3052 = vtanh.f32 %v535_v58 }
 0x117   :  { %v3053_v59 = vpop.eup %3052 }
 0x118   :  { %539 = vrot.lane.b32.xlu1 %v3053_v59, %s3213_s9 }
 0x18a   :  { %v540_v61 = vpop.permute.xlu1 %539 }
 0x18b   :  { %v542_v63 = vmul.f32 %v540_v61, %v537_v60  ;;  %v2812_v61 = vld [vmem:[%s4156_s0 + $0x90] sm:$0xff] }
 0x18d   :  { %v544_v1 = vadd.f32 %v543_v62, %v542_v63 }
 0x18f   :  { %549 = vrot.lane.b32.xlu1 %v544_v1, %s3213_s9 }
 0x193   :  { %198 = vperm.xlu1 %3047, %v2811_v10  }
 0x201   :  { %v550_v13 = vpop.permute.xlu1 %549 }
 0x202   :  { %2828 = vmatmul.mubr.msk.f32.vlgmr.msra.gmra.mxu1 %vm390_vm0, %v550_v13 }
 0x203   :  { %764 = vmatpush1.msra.mxu1 %v3249_v3  ;;  %811 = vmatprep.mubr.f32.mxu1 %v3211_v0 }
 0x204   :  { %765 = vmatprep.subr.mxu1 %v3254_v4 }
 0x205   :  { %766 = vmatpush1.msra.mxu1 %v3260_v5 }
 0x206   :  { %767 = vmatprep.subr.mxu1 %v3267_v6 }
 0x207   :  { %768 = vmatpush1.msra.mxu1 %v3274_v7 }
 0x208   :  { %769 = vmatprep.subr.mxu1 %v3281_v8 }
 0x209   :  { %770 = vmatpush1.msra.mxu1 %v3288_v9 }
 0x20a   :  { %771 = vmatprep.subr.mxu1 %v3298_v11 }
 0x20b   :  { %772 = vmatpush1.msra.mxu1 %v3304_v12 }
 0x20c   :  { %773 = vmatprep.subr.mxu1 %v3314_v14 }
 0x20d   :  { %774 = vmatpush1.msra.mxu1 %v3320_v15 }
 0x20e   :  { %v199_v25 = vpop.permute.xlu1 %198  ;;  %775 = vmatprep.subr.mxu1 %v3327_v16 }
 0x20f   :  { %v284_v32 = vmul.f32 %v3404_v30, %v199_v25  ;;  %v285_v33 = vmul.f32 %v3407_v31, %v199_v25  ;;  %776 = vmatpush1.msra.mxu1 %v3333_v17 }
 0x210   :  { %777 = vmatprep.subr.mxu1 %v3343_v19 }
 0x211   :  { %v316_v34 = vadd.f32 %v284_v32, %v144_v26  ;;  %v317_v35 = vadd.f32 %v285_v33, %v145_v29  ;;  %778 = vmatpush1.msra.mxu1 %v3350_v20 }
 0x212   :  { %957 = vmatprep.subr.mxu1 %v3244_v2 }
 0x213   :  { %v359_v36 = vadd.f32 %v3417_v38, %v316_v34  ;;  %v360_v37 = vadd.f32 %v3420_v39, %v317_v35 }
 0x215   :  { %393 = vst.msk [vmem:[#allocation2 + $0x18] sm:$0xff] %vm390_vm0, %v360_v37 }
 0x21c   :  { %v547_v51 = vld [vmem:[#allocation2 + $0x18] sm:$0xff] }
 0x2c2   :  { %v619_v40 = vpop.f32.mrf.mxu1 }
 0x2c3   :  { %v620_v41 = vadd.f32 %v619_v40, %v3429_v45 }
 0x2c4   :  { %v621_v47 = vpop.f32.mrf.mxu1 }
 0x2c5   :  { %v624_v42 = vadd.f32 %v620_v41, %v359_v36  ;;  %v622_v48 = vadd.f32 %v621_v47, %v3433_v52 }
 0x2c7   :  { %v2829_v43 = vmul.f32 -1.442695, %v624_v42 }
 0x2c9   :  { %3054 = vpow2.f32 %v2829_v43 }
 0x2d6   :  { %v3055_v44 = vpop.eup %3054 }
 0x2d7   :  { %v628_v46 = vadd.f32 1.0, %v3055_v44 }
 0x2d9   :  { %3056 = vrcp.f32 %v628_v46 }
 0x2e6   :  { %v3057_v49 = vpop.eup %3056 }
 0x2e7   :  { %v631_v50 = vmul.f32 %v3057_v49, %v622_v48  ;;  %v634_v56 = vsub.f32 1.0, %v3057_v49  ;;  %v640_v58 = vmul.f32 %v3057_v49, %v544_v1 }
 0x2e9   :  { %v632_v53 = vadd.f32 %v631_v50, %v547_v51  ;;  %v38_v50 = vld [vmem:[%s4156_s0 + $0x18] sm:$0xff] }
 0x2eb   :  { %3058 = vtanh.f32 %v632_v53 }
 0x2f8   :  { %v3059_v54 = vpop.eup %3058 }
 0x2f9   :  { %636 = vrot.lane.b32.xlu0 %v3059_v54, %s3213_s9 }
 0x2fd   :  { %63 = vperm.xlu0 %3046, %v37_v55  }
 0x36b   :  { %v637_v57 = vpop.permute.xlu0 %636 }
 0x36c   :  { %v639_v59 = vmul.f32 %v637_v57, %v634_v56  ;;  %v2813_v57 = vld [vmem:[%s4156_s0 + $0x98] sm:$0xff] }
 0x36e   :  { %v641_v60 = vadd.f32 %v640_v58, %v639_v59 }
 0x370   :  { %646 = vrot.lane.b32.xlu1 %v641_v60, %s3213_s9 }
 0x374   :  { %203 = vperm.xlu1 %3047, %v2812_v61  }
 0x378   :  { %v64_v63 = vpop.permute.xlu0 %63 }
 0x379   :  { %v146_v10 = vmul.f32 %v3398_v27, %v64_v63  ;;  %v147_v13 = vmul.f32 %v3401_v28, %v64_v63 }
 0x3e2   :  { %v647_v62 = vpop.permute.xlu1 %646 }
 0x3e3   :  { %2830 = vmatmul.mubr.msk.f32.vlgmr.msra.gmra.mxu0 %vm390_vm0, %v647_v62 }
 0x3e4   :  { %861 = vmatpush1.msra.mxu0 %v3249_v3  ;;  %908 = vmatprep.mubr.f32.mxu0 %v3211_v0 }
 0x3e5   :  { %862 = vmatprep.subr.mxu0 %v3254_v4 }
 0x3e6   :  { %863 = vmatpush1.msra.mxu0 %v3260_v5 }
 0x3e7   :  { %864 = vmatprep.subr.mxu0 %v3267_v6 }
 0x3e8   :  { %865 = vmatpush1.msra.mxu0 %v3274_v7 }
 0x3e9   :  { %866 = vmatprep.subr.mxu0 %v3281_v8 }
 0x3ea   :  { %867 = vmatpush1.msra.mxu0 %v3288_v9 }
 0x3eb   :  { %868 = vmatprep.subr.mxu0 %v3298_v11 }
 0x3ec   :  { %869 = vmatpush1.msra.mxu0 %v3304_v12 }
 0x3ed   :  { %870 = vmatprep.subr.mxu0 %v3314_v14 }
 0x3ee   :  { %871 = vmatpush1.msra.mxu0 %v3320_v15 }
 0x3ef   :  { %v204_v1 = vpop.permute.xlu1 %203  ;;  %872 = vmatprep.subr.mxu0 %v3327_v16 }
 0x3f0   :  { %v286_v18 = vmul.f32 %v3404_v30, %v204_v1  ;;  %v287_v25 = vmul.f32 %v3407_v31, %v204_v1  ;;  %873 = vmatpush1.msra.mxu0 %v3333_v17 }
 0x3f1   :  { %874 = vmatprep.subr.mxu0 %v3343_v19 }
 0x3f2   :  { %v318_v26 = vadd.f32 %v286_v18, %v146_v10  ;;  %v319_v29 = vadd.f32 %v287_v25, %v147_v13  ;;  %875 = vmatpush1.msra.mxu0 %v3350_v20 }
 0x3f3   :  { %1054 = vmatprep.subr.mxu0 %v3244_v2 }
 0x3f4   :  { %v361_v32 = vadd.f32 %v3417_v38, %v318_v26  ;;  %v362_v33 = vadd.f32 %v3420_v39, %v319_v29 }
 0x3f6   :  { %395 = vst.msk [vmem:[#allocation2 + $0x28] sm:$0xff] %vm390_vm0, %v362_v33 }
 0x3fd   :  { %v644_v47 = vld [vmem:[#allocation2 + $0x28] sm:$0xff] }
 0x4a3   :  { %v716_v34 = vpop.f32.mrf.mxu0 }
 0x4a4   :  { %v717_v35 = vadd.f32 %v716_v34, %v3429_v45 }
 0x4a5   :  { %v718_v42 = vpop.f32.mrf.mxu0 }
 0x4a6   :  { %v721_v36 = vadd.f32 %v717_v35, %v361_v32  ;;  %v719_v43 = vadd.f32 %v718_v42, %v3433_v52 }
 0x4a8   :  { %v2831_v37 = vmul.f32 -1.442695, %v721_v36 }
 0x4aa   :  { %3060 = vpow2.f32 %v2831_v37 }
 0x4b7   :  { %v3061_v40 = vpop.eup %3060 }
 0x4b8   :  { %v725_v41 = vadd.f32 1.0, %v3061_v40 }
 0x4ba   :  { %3062 = vrcp.f32 %v725_v41 }
 0x4c7   :  { %v3063_v44 = vpop.eup %3062 }
 0x4c8   :  { %v728_v46 = vmul.f32 %v3063_v44, %v719_v43  ;;  %v731_v51 = vsub.f32 1.0, %v3063_v44  ;;  %v737_v54 = vmul.f32 %v3063_v44, %v641_v60 }
 0x4ca   :  { %v729_v48 = vadd.f32 %v728_v46, %v644_v47  ;;  %v39_v46 = vld [vmem:[%s4156_s0 + $0x20] sm:$0xff] }
 0x4cc   :  { %3064 = vtanh.f32 %v729_v48 }
 0x4d9   :  { %v3065_v49 = vpop.eup %3064 }
 0x4da   :  { %733 = vrot.lane.b32.xlu0 %v3065_v49, %s3213_s9 }
 0x4de   :  { %68 = vperm.xlu0 %3046, %v38_v50  }
 0x54c   :  { %v734_v53 = vpop.permute.xlu0 %733 }
 0x54d   :  { %v736_v55 = vmul.f32 %v734_v53, %v731_v51  ;;  %v2814_v53 = vld [vmem:[%s4156_s0 + $0xa0] sm:$0xff] }
 0x54f   :  { %v738_v56 = vadd.f32 %v737_v54, %v736_v55 }
 0x551   :  { %743 = vrot.lane.b32.xlu1 %v738_v56, %s3213_s9 }
 0x555   :  { %208 = vperm.xlu1 %3047, %v2813_v57  }
 0x559   :  { %v69_v59 = vpop.permute.xlu0 %68 }
 0x55a   :  { %v148_v61 = vmul.f32 %v3398_v27, %v69_v59  ;;  %v149_v62 = vmul.f32 %v3401_v28, %v69_v59 }
 0x5c3   :  { %v744_v58 = vpop.permute.xlu1 %743 }
 0x5c4   :  { %2832 = vmatmul.mubr.msk.f32.vlgmr.msra.gmra.mxu1 %vm390_vm0, %v744_v58 }
 0x5c5   :  { %958 = vmatpush1.msra.mxu1 %v3249_v3  ;;  %1005 = vmatprep.mubr.f32.mxu1 %v3211_v0 }
 0x5c6   :  { %959 = vmatprep.subr.mxu1 %v3254_v4 }
 0x5c7   :  { %960 = vmatpush1.msra.mxu1 %v3260_v5 }
 0x5c8   :  { %961 = vmatprep.subr.mxu1 %v3267_v6 }
 0x5c9   :  { %962 = vmatpush1.msra.mxu1 %v3274_v7 }
 0x5ca   :  { %963 = vmatprep.subr.mxu1 %v3281_v8 }
 0x5cb   :  { %964 = vmatpush1.msra.mxu1 %v3288_v9 }
 0x5cc   :  { %965 = vmatprep.subr.mxu1 %v3298_v11 }
 0x5cd   :  { %966 = vmatpush1.msra.mxu1 %v3304_v12 }
 0x5ce   :  { %967 = vmatprep.subr.mxu1 %v3314_v14 }
 0x5cf   :  { %968 = vmatpush1.msra.mxu1 %v3320_v15 }
 0x5d0   :  { %v209_v60 = vpop.permute.xlu1 %208  ;;  %969 = vmatprep.subr.mxu1 %v3327_v16 }
 0x5d1   :  { %v288_v63 = vmul.f32 %v3404_v30, %v209_v60  ;;  %v289_v1 = vmul.f32 %v3407_v31, %v209_v60  ;;  %970 = vmatpush1.msra.mxu1 %v3333_v17 }
 0x5d2   :  { %971 = vmatprep.subr.mxu1 %v3343_v19 }
 0x5d3   :  { %v320_v10 = vadd.f32 %v288_v63, %v148_v61  ;;  %v321_v13 = vadd.f32 %v289_v1, %v149_v62  ;;  %972 = vmatpush1.msra.mxu1 %v3350_v20 }
 0x5d4   :  { %1151 = vmatprep.subr.mxu1 %v3244_v2 }
 0x5d5   :  { %v363_v18 = vadd.f32 %v3417_v38, %v320_v10  ;;  %v364_v25 = vadd.f32 %v3420_v39, %v321_v13 }
 0x5d7   :  { %397 = vst.msk [vmem:[#allocation2 + $0x38] sm:$0xff] %vm390_vm0, %v364_v25 }
 0x5de   :  { %v741_v42 = vld [vmem:[#allocation2 + $0x38] sm:$0xff] }
 0x684   :  { %v813_v26 = vpop.f32.mrf.mxu1 }
 0x685   :  { %v814_v29 = vadd.f32 %v813_v26, %v3429_v45 }
 0x686   :  { %v815_v36 = vpop.f32.mrf.mxu1 }
 0x687   :  { %v818_v32 = vadd.f32 %v814_v29, %v363_v18  ;;  %v816_v37 = vadd.f32 %v815_v36, %v3433_v52 }
 0x689   :  { %v2833_v33 = vmul.f32 -1.442695, %v818_v32 }
 0x68b   :  { %3066 = vpow2.f32 %v2833_v33 }
 0x698   :  { %v3067_v34 = vpop.eup %3066 }
 0x699   :  { %v822_v35 = vadd.f32 1.0, %v3067_v34 }
 0x69b   :  { %3068 = vrcp.f32 %v822_v35 }
 0x6a8   :  { %v3069_v40 = vpop.eup %3068 }
 0x6a9   :  { %v825_v41 = vmul.f32 %v3069_v40, %v816_v37  ;;  %v828_v47 = vsub.f32 1.0, %v3069_v40  ;;  %v834_v49 = vmul.f32 %v3069_v40, %v738_v56 }
 0x6ab   :  { %v826_v43 = vadd.f32 %v825_v41, %v741_v42  ;;  %v40_v41 = vld [vmem:[%s4156_s0 + $0x28] sm:$0xff] }
 0x6ad   :  { %3070 = vtanh.f32 %v826_v43 }
 0x6ba   :  { %v3071_v44 = vpop.eup %3070 }
 0x6bb   :  { %830 = vrot.lane.b32.xlu0 %v3071_v44, %s3213_s9 }
 0x6bf   :  { %73 = vperm.xlu0 %3046, %v39_v46  }
 0x72d   :  { %v831_v48 = vpop.permute.xlu0 %830 }
 0x72e   :  { %v833_v50 = vmul.f32 %v831_v48, %v828_v47  ;;  %v2815_v48 = vld [vmem:[%s4156_s0 + $0xa8] sm:$0xff] }
 0x730   :  { %v835_v51 = vadd.f32 %v834_v49, %v833_v50 }
 0x732   :  { %840 = vrot.lane.b32.xlu1 %v835_v51, %s3213_s9 }
 0x736   :  { %213 = vperm.xlu1 %3047, %v2814_v53  }
 0x73a   :  { %v74_v55 = vpop.permute.xlu0 %73 }
 0x73b   :  { %v150_v57 = vmul.f32 %v3398_v27, %v74_v55  ;;  %v151_v58 = vmul.f32 %v3401_v28, %v74_v55 }
 0x7a4   :  { %v841_v54 = vpop.permute.xlu1 %840 }
 0x7a5   :  { %2834 = vmatmul.mubr.msk.f32.vlgmr.msra.gmra.mxu0 %vm390_vm0, %v841_v54 }
 0x7a6   :  { %1055 = vmatpush1.msra.mxu0 %v3249_v3  ;;  %1102 = vmatprep.mubr.f32.mxu0 %v3211_v0 }
 0x7a7   :  { %1056 = vmatprep.subr.mxu0 %v3254_v4 }
 0x7a8   :  { %1057 = vmatpush1.msra.mxu0 %v3260_v5 }
 0x7a9   :  { %1058 = vmatprep.subr.mxu0 %v3267_v6 }
 0x7aa   :  { %1059 = vmatpush1.msra.mxu0 %v3274_v7 }
 0x7ab   :  { %1060 = vmatprep.subr.mxu0 %v3281_v8 }
 0x7ac   :  { %1061 = vmatpush1.msra.mxu0 %v3288_v9 }
 0x7ad   :  { %1062 = vmatprep.subr.mxu0 %v3298_v11 }
 0x7ae   :  { %1063 = vmatpush1.msra.mxu0 %v3304_v12 }
 0x7af   :  { %1064 = vmatprep.subr.mxu0 %v3314_v14 }
 0x7b0   :  { %1065 = vmatpush1.msra.mxu0 %v3320_v15 }
 0x7b1   :  { %v214_v56 = vpop.permute.xlu1 %213  ;;  %1066 = vmatprep.subr.mxu0 %v3327_v16 }
 0x7b2   :  { %v290_v59 = vmul.f32 %v3404_v30, %v214_v56  ;;  %v291_v60 = vmul.f32 %v3407_v31, %v214_v56  ;;  %1067 = vmatpush1.msra.mxu0 %v3333_v17 }
 0x7b3   :  { %1068 = vmatprep.subr.mxu0 %v3343_v19 }
 0x7b4   :  { %v322_v61 = vadd.f32 %v290_v59, %v150_v57  ;;  %v323_v62 = vadd.f32 %v291_v60, %v151_v58  ;;  %1069 = vmatpush1.msra.mxu0 %v3350_v20 }
 0x7b5   :  { %1248 = vmatprep.subr.mxu0 %v3244_v2 }
 0x7b6   :  { %v365_v63 = vadd.f32 %v3417_v38, %v322_v61  ;;  %v366_v1 = vadd.f32 %v3420_v39, %v323_v62 }
 0x7b8   :  { %399 = vst.msk [vmem:[#allocation2 + $0x48] sm:$0xff] %vm390_vm0, %v366_v1 }
 0x7bf   :  { %v838_v36 = vld [vmem:[#allocation2 + $0x48] sm:$0xff] }
 0x865   :  { %v910_v10 = vpop.f32.mrf.mxu0 }
 0x866   :  { %v911_v13 = vadd.f32 %v910_v10, %v3429_v45 }
 0x867   :  { %v912_v32 = vpop.f32.mrf.mxu0 }
 0x868   :  { %v915_v18 = vadd.f32 %v911_v13, %v365_v63  ;;  %v913_v33 = vadd.f32 %v912_v32, %v3433_v52 }
 0x86a   :  { %v2835_v25 = vmul.f32 -1.442695, %v915_v18 }
 0x86c   :  { %3072 = vpow2.f32 %v2835_v25 }
 0x879   :  { %v3073_v26 = vpop.eup %3072 }
 0x87a   :  { %v919_v29 = vadd.f32 1.0, %v3073_v26 }
 0x87c   :  { %3074 = vrcp.f32 %v919_v29 }
 0x889   :  { %v3075_v34 = vpop.eup %3074 }
 0x88a   :  { %v922_v35 = vmul.f32 %v3075_v34, %v913_v33  ;;  %v925_v42 = vsub.f32 1.0, %v3075_v34  ;;  %v931_v44 = vmul.f32 %v3075_v34, %v835_v51 }
 0x88c   :  { %v923_v37 = vadd.f32 %v922_v35, %v838_v36  ;;  %v41_v35 = vld [vmem:[%s4156_s0 + $0x30] sm:$0xff] }
 0x88e   :  { %3076 = vtanh.f32 %v923_v37 }
 0x89b   :  { %v3077_v40 = vpop.eup %3076 }
 0x89c   :  { %927 = vrot.lane.b32.xlu0 %v3077_v40, %s3213_s9 }
 0x8a0   :  { %78 = vperm.xlu0 %3046, %v40_v41  }
 0x90e   :  { %v928_v43 = vpop.permute.xlu0 %927 }
 0x90f   :  { %v930_v46 = vmul.f32 %v928_v43, %v925_v42  ;;  %v2816_v43 = vld [vmem:[%s4156_s0 + $0xb0] sm:$0xff] }
 0x911   :  { %v932_v47 = vadd.f32 %v931_v44, %v930_v46 }
 0x913   :  { %937 = vrot.lane.b32.xlu1 %v932_v47, %s3213_s9 }
 0x917   :  { %218 = vperm.xlu1 %3047, %v2815_v48  }
 0x91b   :  { %v79_v50 = vpop.permute.xlu0 %78 }
 0x91c   :  { %v152_v53 = vmul.f32 %v3398_v27, %v79_v50  ;;  %v153_v54 = vmul.f32 %v3401_v28, %v79_v50 }
 0x985   :  { %v938_v49 = vpop.permute.xlu1 %937 }
 0x986   :  { %2836 = vmatmul.mubr.msk.f32.vlgmr.msra.gmra.mxu1 %vm390_vm0, %v938_v49 }
 0x987   :  { %1152 = vmatpush1.msra.mxu1 %v3249_v3  ;;  %1199 = vmatprep.mubr.f32.mxu1 %v3211_v0 }
 0x988   :  { %1153 = vmatprep.subr.mxu1 %v3254_v4 }
 0x989   :  { %1154 = vmatpush1.msra.mxu1 %v3260_v5 }
 0x98a   :  { %1155 = vmatprep.subr.mxu1 %v3267_v6 }
 0x98b   :  { %1156 = vmatpush1.msra.mxu1 %v3274_v7 }
 0x98c   :  { %1157 = vmatprep.subr.mxu1 %v3281_v8 }
 0x98d   :  { %1158 = vmatpush1.msra.mxu1 %v3288_v9 }
 0x98e   :  { %1159 = vmatprep.subr.mxu1 %v3298_v11 }
 0x98f   :  { %1160 = vmatpush1.msra.mxu1 %v3304_v12 }
 0x990   :  { %1161 = vmatprep.subr.mxu1 %v3314_v14 }
 0x991   :  { %1162 = vmatpush1.msra.mxu1 %v3320_v15 }
 0x992   :  { %v219_v51 = vpop.permute.xlu1 %218  ;;  %1163 = vmatprep.subr.mxu1 %v3327_v16 }
 0x993   :  { %v292_v55 = vmul.f32 %v3404_v30, %v219_v51  ;;  %v293_v56 = vmul.f32 %v3407_v31, %v219_v51  ;;  %1164 = vmatpush1.msra.mxu1 %v3333_v17 }
 0x994   :  { %1165 = vmatprep.subr.mxu1 %v3343_v19 }
 0x995   :  { %v324_v57 = vadd.f32 %v292_v55, %v152_v53  ;;  %v325_v58 = vadd.f32 %v293_v56, %v153_v54  ;;  %1166 = vmatpush1.msra.mxu1 %v3350_v20 }
 0x996   :  { %1345 = vmatprep.subr.mxu1 %v3244_v2 }
 0x997   :  { %v367_v59 = vadd.f32 %v3417_v38, %v324_v57  ;;  %v368_v60 = vadd.f32 %v3420_v39, %v325_v58 }
 0x999   :  { %401 = vst.msk [vmem:[#allocation2 + $0x58] sm:$0xff] %vm390_vm0, %v368_v60 }
 0x9a0   :  { %v935_v32 = vld [vmem:[#allocation2 + $0x58] sm:$0xff] }
 0xa46   :  { %v1007_v61 = vpop.f32.mrf.mxu1 }
 0xa47   :  { %v1008_v62 = vadd.f32 %v1007_v61, %v3429_v45 }
 0xa48   :  { %v1009_v18 = vpop.f32.mrf.mxu1 }
 0xa49   :  { %v1012_v63 = vadd.f32 %v1008_v62, %v367_v59  ;;  %v1010_v25 = vadd.f32 %v1009_v18, %v3433_v52 }
 0xa4b   :  { %v2837_v1 = vmul.f32 -1.442695, %v1012_v63 }
 0xa4d   :  { %3078 = vpow2.f32 %v2837_v1 }
 0xa5a   :  { %v3079_v10 = vpop.eup %3078 }
 0xa5b   :  { %v1016_v13 = vadd.f32 1.0, %v3079_v10 }
 0xa5d   :  { %3080 = vrcp.f32 %v1016_v13 }
 0xa6a   :  { %v3081_v26 = vpop.eup %3080 }
 0xa6b   :  { %v1019_v29 = vmul.f32 %v3081_v26, %v1010_v25  ;;  %v1022_v36 = vsub.f32 1.0, %v3081_v26  ;;  %v1028_v40 = vmul.f32 %v3081_v26, %v932_v47 }
 0xa6d   :  { %v1020_v33 = vadd.f32 %v1019_v29, %v935_v32  ;;  %v42_v29 = vld [vmem:[%s4156_s0 + $0x38] sm:$0xff] }
 0xa6f   :  { %3082 = vtanh.f32 %v1020_v33 }
 0xa7c   :  { %v3083_v34 = vpop.eup %3082 }
 0xa7d   :  { %1024 = vrot.lane.b32.xlu0 %v3083_v34, %s3213_s9 }
 0xa81   :  { %83 = vperm.xlu0 %3046, %v41_v35  }
 0xaef   :  { %v1025_v37 = vpop.permute.xlu0 %1024 }
 0xaf0   :  { %v1027_v41 = vmul.f32 %v1025_v37, %v1022_v36  ;;  %v2817_v37 = vld [vmem:[%s4156_s0 + $0xb8] sm:$0xff] }
 0xaf2   :  { %v1029_v42 = vadd.f32 %v1028_v40, %v1027_v41 }
 0xaf4   :  { %1034 = vrot.lane.b32.xlu1 %v1029_v42, %s3213_s9 }
 0xaf8   :  { %223 = vperm.xlu1 %3047, %v2816_v43  }
 0xafc   :  { %v84_v46 = vpop.permute.xlu0 %83 }
 0xafd   :  { %v154_v48 = vmul.f32 %v3398_v27, %v84_v46  ;;  %v155_v49 = vmul.f32 %v3401_v28, %v84_v46 }
 0xb66   :  { %v1035_v44 = vpop.permute.xlu1 %1034 }
 0xb67   :  { %2838 = vmatmul.mubr.msk.f32.vlgmr.msra.gmra.mxu0 %vm390_vm0, %v1035_v44 }
 0xb68   :  { %1249 = vmatpush1.msra.mxu0 %v3249_v3  ;;  %1296 = vmatprep.mubr.f32.mxu0 %v3211_v0 }
 0xb69   :  { %1250 = vmatprep.subr.mxu0 %v3254_v4 }
 0xb6a   :  { %1251 = vmatpush1.msra.mxu0 %v3260_v5 }
 0xb6b   :  { %1252 = vmatprep.subr.mxu0 %v3267_v6 }
 0xb6c   :  { %1253 = vmatpush1.msra.mxu0 %v3274_v7 }
 0xb6d   :  { %1254 = vmatprep.subr.mxu0 %v3281_v8 }
 0xb6e   :  { %1255 = vmatpush1.msra.mxu0 %v3288_v9 }
 0xb6f   :  { %1256 = vmatprep.subr.mxu0 %v3298_v11 }
 0xb70   :  { %1257 = vmatpush1.msra.mxu0 %v3304_v12 }
 0xb71   :  { %1258 = vmatprep.subr.mxu0 %v3314_v14 }
 0xb72   :  { %1259 = vmatpush1.msra.mxu0 %v3320_v15 }
 0xb73   :  { %v224_v47 = vpop.permute.xlu1 %223  ;;  %1260 = vmatprep.subr.mxu0 %v3327_v16 }
 0xb74   :  { %v294_v50 = vmul.f32 %v3404_v30, %v224_v47  ;;  %v295_v51 = vmul.f32 %v3407_v31, %v224_v47  ;;  %1261 = vmatpush1.msra.mxu0 %v3333_v17 }
 0xb75   :  { %1262 = vmatprep.subr.mxu0 %v3343_v19 }
 0xb76   :  { %v326_v53 = vadd.f32 %v294_v50, %v154_v48  ;;  %v327_v54 = vadd.f32 %v295_v51, %v155_v49  ;;  %1263 = vmatpush1.msra.mxu0 %v3350_v20  ;;  %v43_v49 = vld [vmem:[%s4156_s0 + $0x40] sm:$0xff] }
 0xb77   :  { %1442 = vmatprep.subr.mxu0 %v3244_v2 }
 0xb78   :  { %v369_v55 = vadd.f32 %v3417_v38, %v326_v53  ;;  %v370_v56 = vadd.f32 %v3420_v39, %v327_v54 }
 0xb7a   :  { %403 = vst.msk [vmem:[#allocation2 + $0x68] sm:$0xff] %vm390_vm0, %v370_v56  ;;  %v2818_v56 = vld [vmem:[%s4156_s0 + $0xc0] sm:$0xff] }
 0xb81   :  { %v1032_v18 = vld [vmem:[#allocation2 + $0x68] sm:$0xff] }
 0xc27   :  { %v1104_v57 = vpop.f32.mrf.mxu0 }
 0xc28   :  { %v1105_v58 = vadd.f32 %v1104_v57, %v3429_v45 }
 0xc29   :  { %v1106_v63 = vpop.f32.mrf.mxu0 }
 0xc2a   :  { %v1109_v59 = vadd.f32 %v1105_v58, %v369_v55  ;;  %v1107_v1 = vadd.f32 %v1106_v63, %v3433_v52  ;;  %v3693_v58 = vld [vmem:[%s4157_s1 + $0x70] sm:$0xff]  ;;  %v3724_v63 = vld [vmem:[%s4157_s1 + $0x48] sm:$0xff] }
 0xc2c   :  { %v2839_v60 = vmul.f32 -1.442695, %v1109_v59  ;;  %v3700_v59 = vld [vmem:[%s4157_s1 + $0x68] sm:$0xff] }
 0xc2e   :  { %3084 = vpow2.f32 %v2839_v60  ;;  %v3706_v60 = vld [vmem:[%s4157_s1 + $0x60] sm:$0xff] }
 0xc3b   :  { %v3085_v61 = vpop.eup %3084 }
 0xc3c   :  { %v1113_v62 = vadd.f32 1.0, %v3085_v61  ;;  %v3712_v61 = vld [vmem:[%s4157_s1 + $0x58] sm:$0xff] }
 0xc3e   :  { %3086 = vrcp.f32 %v1113_v62  ;;  %v3718_v62 = vld [vmem:[%s4157_s1 + $0x50] sm:$0xff] }
 0xc4b   :  { %v3087_v10 = vpop.eup %3086 }
 0xc4c   :  { %v1116_v13 = vmul.f32 %v3087_v10, %v1107_v1  ;;  %v1119_v32 = vsub.f32 1.0, %v3087_v10  ;;  %v1125_v34 = vmul.f32 %v3087_v10, %v1029_v42  ;;  %v3730_v1 = vld [vmem:[%s4157_s1 + $0x40] sm:$0xff]  ;;  %v3736_v10 = vld [vmem:[%s4157_s1 + $0x38] sm:$0xff] }
 0xc4e   :  { %v1117_v25 = vadd.f32 %v1116_v13, %v1032_v18  ;;  %v3742_v13 = vld [vmem:[%s4157_s1 + $0x30] sm:$0xff] }
 0xc50   :  { %3088 = vtanh.f32 %v1117_v25  ;;  %v3748_v25 = vld [vmem:[%s4157_s1 + $0x28] sm:$0xff] }
 0xc5d   :  { %v3089_v26 = vpop.eup %3088 }
 0xc5e   :  { %1121 = vrot.lane.b32.xlu0 %v3089_v26, %s3213_s9  ;;  %v3754_v26 = vld [vmem:[%s4157_s1 + $0x20] sm:$0xff] }
 0xc62   :  { %88 = vperm.xlu0 %3046, %v42_v29  }
 0xcd0   :  { %v1122_v33 = vpop.permute.xlu0 %1121 }
 0xcd1   :  { %v1124_v35 = vmul.f32 %v1122_v33, %v1119_v32  ;;  %v3760_v32 = vld [vmem:[%s4157_s1 + $0x18] sm:$0xff] }
 0xcd3   :  { %v1126_v36 = vadd.f32 %v1125_v34, %v1124_v35 }
 0xcd5   :  { %1131 = vrot.lane.b32.xlu1 %v1126_v36, %s3213_s9 }
 0xcd9   :  { %228 = vperm.xlu1 %3047, %v2817_v37   ;;  %v3770_v37 = vld [vmem:[%s4157_s1 + $0x10] sm:$0xff] }
 0xcdd   :  { %v89_v41 = vpop.permute.xlu0 %88 }
 0xd47   :  { %v1132_v40 = vpop.permute.xlu1 %1131 }
 0xd48   :  { %2840 = vmatmul.mubr.msk.f32.vlgmr.msra.gmra.mxu1 %vm390_vm0, %v1132_v40  ;;  %v3776_v40 = vld [vmem:[%s4157_s1 + $0x8] sm:$0xff] }
 0xd49   :  { %1346 = vmatpush1.msra.mxu1 %v3249_v3  ;;  %1393 = vmatprep.mubr.f32.mxu1 %v3211_v0 }
 0xd4a   :  { %1347 = vmatprep.subr.mxu1 %v3254_v4  ;;  %v156_v4 = vmul.f32 %v3398_v27, %v89_v41 }
 0xd4b   :  { %1348 = vmatpush1.msra.mxu1 %v3260_v5  ;;  %v157_v5 = vmul.f32 %v3401_v28, %v89_v41 }
 0xd4c   :  { %1349 = vmatprep.subr.mxu1 %v3267_v6 }
 0xd4d   :  { %1350 = vmatpush1.msra.mxu1 %v3274_v7 }
 0xd4e   :  { %1351 = vmatprep.subr.mxu1 %v3281_v8 }
 0xd4f   :  { %1352 = vmatpush1.msra.mxu1 %v3288_v9 }
 0xd50   :  { %1353 = vmatprep.subr.mxu1 %v3298_v11 }
 0xd51   :  { %1354 = vmatpush1.msra.mxu1 %v3304_v12 }
 0xd52   :  { %1355 = vmatprep.subr.mxu1 %v3314_v14 }
 0xd53   :  { %1356 = vmatpush1.msra.mxu1 %v3320_v15 }
 0xd54   :  { %v229_v3 = vpop.permute.xlu1 %228  ;;  %1357 = vmatprep.subr.mxu1 %v3327_v16 }
 0xd55   :  { %v296_v6 = vmul.f32 %v3404_v30, %v229_v3  ;;  %v297_v7 = vmul.f32 %v3407_v31, %v229_v3  ;;  %1358 = vmatpush1.msra.mxu1 %v3333_v17 }
 0xd56   :  { %1359 = vmatprep.subr.mxu1 %v3343_v19 }
 0xd57   :  { %v328_v8 = vadd.f32 %v296_v6, %v156_v4  ;;  %v329_v9 = vadd.f32 %v297_v7, %v157_v5  ;;  %1360 = vmatpush1.msra.mxu1 %v3350_v20  ;;  %v3782_v4 = vld [vmem:[%s4157_s1] sm:$0xff]  ;;  %v3788_v5 = vld [vmem:[%s4157_s1 + $0x78] sm:$0xff] }
 0xd58   :  { %1539 = vmatprep.subr.mxu1 %v3244_v2 }
 0xd59   :  { %v371_v11 = vadd.f32 %v3417_v38, %v328_v8  ;;  %v372_v12 = vadd.f32 %v3420_v39, %v329_v9 }
 0xd5b   :  { %405 = vst.msk [vmem:[#allocation2 + $0x78] sm:$0xff] %vm390_vm0, %v372_v12 }
 0xd62   :  { %v1129_v46 = vld [vmem:[#allocation2 + $0x78] sm:$0xff] }
 0xe08   :  { %v1201_v14 = vpop.f32.mrf.mxu1 }
 0xe09   :  { %v1202_v15 = vadd.f32 %v1201_v14, %v3429_v45 }
 0xe0a   :  { %v1203_v43 = vpop.f32.mrf.mxu1 }
 0xe0b   :  { %v1206_v16 = vadd.f32 %v1202_v15, %v371_v11  ;;  %v1204_v20 = vadd.f32 %v1203_v43, %v3433_v52 }
 0xe0d   :  { %v2841_v42 = vmul.f32 -1.442695, %v1206_v16 }
 0xe0f   :  { %3090 = vpow2.f32 %v2841_v42 }
 0xe1c   :  { %v3091_v17 = vpop.eup %3090 }
 0xe1d   :  { %v1210_v19 = vadd.f32 1.0, %v3091_v17 }
 0xe1f   :  { %3092 = vrcp.f32 %v1210_v19 }
 0xe2c   :  { %v3093_v44 = vpop.eup %3092 }
 0xe2d   :  { %v1213_v2 = vmul.f32 %v3093_v44, %v1204_v20  ;;  %v1216_v50 = vsub.f32 1.0, %v3093_v44  ;;  %v1222_v53 = vmul.f32 %v3093_v44, %v1126_v36 }
 0xe2f   :  { %v1214_v47 = vadd.f32 %v1213_v2, %v1129_v46  ;;  %v44_v2 = vld [vmem:[%s4156_s0 + $0x48] sm:$0xff] }
 0xe31   :  { %3094 = vtanh.f32 %v1214_v47 }
 0xe3e   :  { %v3095_v48 = vpop.eup %3094 }
 0xe3f   :  { %1218 = vrot.lane.b32.xlu0 %v3095_v48, %s3213_s9 }
 0xe43   :  { %93 = vperm.xlu0 %3046, %v43_v49  }
 0xeb1   :  { %v1219_v51 = vpop.permute.xlu0 %1218 }
 0xeb2   :  { %v1221_v54 = vmul.f32 %v1219_v51, %v1216_v50  ;;  %v2819_v51 = vld [vmem:[%s4156_s0 + $0xc8] sm:$0xff] }
 0xeb4   :  { %v3682_v55 = vadd.f32 %v1222_v53, %v1221_v54 }
 0xeb6   :  { %1228 = vrot.lane.b32.xlu1 %v3682_v55, %s3213_s9 }
 0xeba   :  { %233 = vperm.xlu1 %3047, %v2818_v56  }
 0xebe   :  { %v94_v18 = vpop.permute.xlu0 %93 }
 0xebf   :  { %v158_v33 = vmul.f32 %v3398_v27, %v94_v18  ;;  %v159_v34 = vmul.f32 %v3401_v28, %v94_v18 }
 0xf28   :  { %v1229_v57 = vpop.permute.xlu1 %1228 }
 0xf29   :  { %2842 = vmatmul.mubr.msk.f32.vlgmr.msra.gmra.mxu0 %vm390_vm0, %v1229_v57 }
 0xf2a   :  { %1443 = vmatpush1.msra.mxu0 %v3693_v58  ;;  %1490 = vmatprep.mubr.f32.mxu0 %v3211_v0 }
 0xf2b   :  { %1444 = vmatprep.subr.mxu0 %v3700_v59 }
 0xf2c   :  { %1445 = vmatpush1.msra.mxu0 %v3706_v60 }
 0xf2d   :  { %1446 = vmatprep.subr.mxu0 %v3712_v61 }
 0xf2e   :  { %1447 = vmatpush1.msra.mxu0 %v3718_v62 }
 0xf2f   :  { %1448 = vmatprep.subr.mxu0 %v3724_v63 }
 0xf30   :  { %1449 = vmatpush1.msra.mxu0 %v3730_v1 }
 0xf31   :  { %1450 = vmatprep.subr.mxu0 %v3736_v10 }
 0xf32   :  { %1451 = vmatpush1.msra.mxu0 %v3742_v13 }
 0xf33   :  { %1452 = vmatprep.subr.mxu0 %v3748_v25 }
 0xf34   :  { %1453 = vmatpush1.msra.mxu0 %v3754_v26 }
 0xf35   :  { %v234_v29 = vpop.permute.xlu1 %233  ;;  %1454 = vmatprep.subr.mxu0 %v3760_v32 }
 0xf36   :  { %v298_v35 = vmul.f32 %v3404_v30, %v234_v29  ;;  %v299_v36 = vmul.f32 %v3407_v31, %v234_v29  ;;  %1455 = vmatpush1.msra.mxu0 %v3770_v37 }
 0xf37   :  { %1456 = vmatprep.subr.mxu0 %v3776_v40 }
 0xf38   :  { %v330_v41 = vadd.f32 %v298_v35, %v158_v33  ;;  %v331_v3 = vadd.f32 %v299_v36, %v159_v34  ;;  %1457 = vmatpush1.msra.mxu0 %v3782_v4 }
 0xf39   :  { %1636 = vmatprep.subr.mxu0 %v3788_v5 }
 0xf3a   :  { %v373_v6 = vadd.f32 %v3417_v38, %v330_v41  ;;  %v374_v7 = vadd.f32 %v3420_v39, %v331_v3 }
 0xf3c   :  { %407 = vst.msk [vmem:[#allocation2 + $0x88] sm:$0xff] %vm390_vm0, %v374_v7 }
 0xf43   :  { %v1226_v43 = vld [vmem:[#allocation2 + $0x88] sm:$0xff] }
 0xfe9   :  { %v1298_v8 = vpop.f32.mrf.mxu0 }
 0xfea   :  { %v1299_v9 = vadd.f32 %v1298_v8, %v3429_v45 }
 0xfeb   :  { %v1300_v16 = vpop.f32.mrf.mxu0 }
 0xfec   :  { %v1303_v11 = vadd.f32 %v1299_v9, %v373_v6  ;;  %v1301_v42 = vadd.f32 %v1300_v16, %v3433_v52 }
 0xfee   :  { %v2843_v12 = vmul.f32 -1.442695, %v1303_v11 }
 0xff0   :  { %3096 = vpow2.f32 %v2843_v12 }
 0xffd   :  { %v3097_v14 = vpop.eup %3096 }
 0xffe   :  { %v1307_v15 = vadd.f32 1.0, %v3097_v14 }
0x1000   :  { %3098 = vrcp.f32 %v1307_v15 }
0x100d   :  { %v3099_v17 = vpop.eup %3098 }
0x100e   :  { %v1310_v19 = vmul.f32 %v3099_v17, %v1301_v42  ;;  %v1313_v46 = vsub.f32 1.0, %v3099_v17  ;;  %v1319_v48 = vmul.f32 %v3099_v17, %v3682_v55 }
0x1010   :  { %v1311_v20 = vadd.f32 %v1310_v19, %v1226_v43  ;;  %v45_v19 = vld [vmem:[%s4156_s0 + $0x50] sm:$0xff] }
0x1012   :  { %3100 = vtanh.f32 %v1311_v20 }
0x101f   :  { %v3101_v44 = vpop.eup %3100 }
0x1020   :  { %1315 = vrot.lane.b32.xlu0 %v3101_v44, %s3213_s9 }
0x1024   :  { %98 = vperm.xlu0 %3046, %v44_v2  }
0x1092   :  { %v1316_v47 = vpop.permute.xlu0 %1315 }
0x1093   :  { %v1318_v49 = vmul.f32 %v1316_v47, %v1313_v46  ;;  %v2820_v47 = vld [vmem:[%s4156_s0 + $0xd0] sm:$0xff] }
0x1095   :  { %v1320_v50 = vadd.f32 %v1319_v48, %v1318_v49 }
0x1097   :  { %1325 = vrot.lane.b32.xlu1 %v1320_v50, %s3213_s9 }
0x109b   :  { %238 = vperm.xlu1 %3047, %v2819_v51  }
0x109f   :  { %v99_v54 = vpop.permute.xlu0 %98 }
0x10a0   :  { %v160_v56 = vmul.f32 %v3398_v27, %v99_v54  ;;  %v161_v57 = vmul.f32 %v3401_v28, %v99_v54 }
0x1109   :  { %v1326_v53 = vpop.permute.xlu1 %1325 }
0x110a   :  { %2844 = vmatmul.mubr.msk.f32.vlgmr.msra.gmra.mxu1 %vm390_vm0, %v1326_v53 }
0x110b   :  { %1540 = vmatpush1.msra.mxu1 %v3693_v58  ;;  %1587 = vmatprep.mubr.f32.mxu1 %v3211_v0 }
0x110c   :  { %1541 = vmatprep.subr.mxu1 %v3700_v59 }
0x110d   :  { %1542 = vmatpush1.msra.mxu1 %v3706_v60 }
0x110e   :  { %1543 = vmatprep.subr.mxu1 %v3712_v61 }
0x110f   :  { %1544 = vmatpush1.msra.mxu1 %v3718_v62 }
0x1110   :  { %1545 = vmatprep.subr.mxu1 %v3724_v63 }
0x1111   :  { %1546 = vmatpush1.msra.mxu1 %v3730_v1 }
0x1112   :  { %1547 = vmatprep.subr.mxu1 %v3736_v10 }
0x1113   :  { %1548 = vmatpush1.msra.mxu1 %v3742_v13 }
0x1114   :  { %1549 = vmatprep.subr.mxu1 %v3748_v25 }
0x1115   :  { %1550 = vmatpush1.msra.mxu1 %v3754_v26 }
0x1116   :  { %v239_v55 = vpop.permute.xlu1 %238  ;;  %1551 = vmatprep.subr.mxu1 %v3760_v32 }
0x1117   :  { %v300_v18 = vmul.f32 %v3404_v30, %v239_v55  ;;  %v301_v29 = vmul.f32 %v3407_v31, %v239_v55  ;;  %1552 = vmatpush1.msra.mxu1 %v3770_v37 }
0x1118   :  { %1553 = vmatprep.subr.mxu1 %v3776_v40 }
0x1119   :  { %v332_v33 = vadd.f32 %v300_v18, %v160_v56  ;;  %v333_v34 = vadd.f32 %v301_v29, %v161_v57  ;;  %1554 = vmatpush1.msra.mxu1 %v3782_v4 }
0x111a   :  { %1733 = vmatprep.subr.mxu1 %v3788_v5 }
0x111b   :  { %v375_v35 = vadd.f32 %v3417_v38, %v332_v33  ;;  %v376_v36 = vadd.f32 %v3420_v39, %v333_v34 }
0x111d   :  { %409 = vst.msk [vmem:[#allocation2 + $0x98] sm:$0xff] %vm390_vm0, %v376_v36 }
0x1124   :  { %v1323_v16 = vld [vmem:[#allocation2 + $0x98] sm:$0xff] }
0x11ca   :  { %v1395_v41 = vpop.f32.mrf.mxu1 }
0x11cb   :  { %v1396_v3 = vadd.f32 %v1395_v41, %v3429_v45 }
0x11cc   :  { %v1397_v11 = vpop.f32.mrf.mxu1 }
0x11cd   :  { %v1400_v6 = vadd.f32 %v1396_v3, %v375_v35  ;;  %v1398_v12 = vadd.f32 %v1397_v11, %v3433_v52 }
0x11cf   :  { %v2845_v7 = vmul.f32 -1.442695, %v1400_v6 }
0x11d1   :  { %3102 = vpow2.f32 %v2845_v7 }
0x11de   :  { %v3103_v8 = vpop.eup %3102 }
0x11df   :  { %v1404_v9 = vadd.f32 1.0, %v3103_v8 }
0x11e1   :  { %3104 = vrcp.f32 %v1404_v9 }
0x11ee   :  { %v3105_v14 = vpop.eup %3104 }
0x11ef   :  { %v1407_v15 = vmul.f32 %v3105_v14, %v1398_v12  ;;  %v1410_v43 = vsub.f32 1.0, %v3105_v14  ;;  %v1416_v44 = vmul.f32 %v3105_v14, %v1320_v50 }
0x11f1   :  { %v1408_v42 = vadd.f32 %v1407_v15, %v1323_v16  ;;  %v46_v15 = vld [vmem:[%s4156_s0 + $0x58] sm:$0xff] }
0x11f3   :  { %3106 = vtanh.f32 %v1408_v42 }
0x1200   :  { %v3107_v17 = vpop.eup %3106 }
0x1201   :  { %1412 = vrot.lane.b32.xlu0 %v3107_v17, %s3213_s9 }
0x1205   :  { %103 = vperm.xlu0 %3046, %v45_v19  }
0x1273   :  { %v1413_v20 = vpop.permute.xlu0 %1412 }
0x1274   :  { %v1415_v2 = vmul.f32 %v1413_v20, %v1410_v43  ;;  %v2821_v20 = vld [vmem:[%s4156_s0 + $0xd8] sm:$0xff] }
0x1276   :  { %v1417_v46 = vadd.f32 %v1416_v44, %v1415_v2 }
0x1278   :  { %1422 = vrot.lane.b32.xlu1 %v1417_v46, %s3213_s9 }
0x127c   :  { %243 = vperm.xlu1 %3047, %v2820_v47  }
0x1280   :  { %v104_v49 = vpop.permute.xlu0 %103 }
0x1281   :  { %v162_v51 = vmul.f32 %v3398_v27, %v104_v49  ;;  %v163_v53 = vmul.f32 %v3401_v28, %v104_v49 }
0x12ea   :  { %v1423_v48 = vpop.permute.xlu1 %1422 }
0x12eb   :  { %2846 = vmatmul.mubr.msk.f32.vlgmr.msra.gmra.mxu0 %vm390_vm0, %v1423_v48 }
0x12ec   :  { %1637 = vmatpush1.msra.mxu0 %v3693_v58  ;;  %1684 = vmatprep.mubr.f32.mxu0 %v3211_v0 }
0x12ed   :  { %1638 = vmatprep.subr.mxu0 %v3700_v59 }
0x12ee   :  { %1639 = vmatpush1.msra.mxu0 %v3706_v60 }
0x12ef   :  { %1640 = vmatprep.subr.mxu0 %v3712_v61 }
0x12f0   :  { %1641 = vmatpush1.msra.mxu0 %v3718_v62 }
0x12f1   :  { %1642 = vmatprep.subr.mxu0 %v3724_v63 }
0x12f2   :  { %1643 = vmatpush1.msra.mxu0 %v3730_v1 }
0x12f3   :  { %1644 = vmatprep.subr.mxu0 %v3736_v10 }
0x12f4   :  { %1645 = vmatpush1.msra.mxu0 %v3742_v13 }
0x12f5   :  { %1646 = vmatprep.subr.mxu0 %v3748_v25 }
0x12f6   :  { %1647 = vmatpush1.msra.mxu0 %v3754_v26 }
0x12f7   :  { %v244_v50 = vpop.permute.xlu1 %243  ;;  %1648 = vmatprep.subr.mxu0 %v3760_v32 }
0x12f8   :  { %v302_v54 = vmul.f32 %v3404_v30, %v244_v50  ;;  %v303_v55 = vmul.f32 %v3407_v31, %v244_v50  ;;  %1649 = vmatpush1.msra.mxu0 %v3770_v37 }
0x12f9   :  { %1650 = vmatprep.subr.mxu0 %v3776_v40 }
0x12fa   :  { %v334_v56 = vadd.f32 %v302_v54, %v162_v51  ;;  %v335_v57 = vadd.f32 %v303_v55, %v163_v53  ;;  %1651 = vmatpush1.msra.mxu0 %v3782_v4 }
0x12fb   :  { %1830 = vmatprep.subr.mxu0 %v3788_v5 }
0x12fc   :  { %v377_v18 = vadd.f32 %v3417_v38, %v334_v56  ;;  %v378_v29 = vadd.f32 %v3420_v39, %v335_v57 }
0x12fe   :  { %411 = vst.msk [vmem:[#allocation2 + $0xa8] sm:$0xff] %vm390_vm0, %v378_v29 }
0x1305   :  { %v1420_v11 = vld [vmem:[#allocation2 + $0xa8] sm:$0xff] }
0x13ab   :  { %v1492_v33 = vpop.f32.mrf.mxu0 }
0x13ac   :  { %v1493_v34 = vadd.f32 %v1492_v33, %v3429_v45 }
0x13ad   :  { %v1494_v6 = vpop.f32.mrf.mxu0 }
0x13ae   :  { %v1497_v35 = vadd.f32 %v1493_v34, %v377_v18  ;;  %v1495_v7 = vadd.f32 %v1494_v6, %v3433_v52 }
0x13b0   :  { %v2847_v36 = vmul.f32 -1.442695, %v1497_v35 }
0x13b2   :  { %3108 = vpow2.f32 %v2847_v36 }
0x13bf   :  { %v3109_v41 = vpop.eup %3108 }
0x13c0   :  { %v1501_v3 = vadd.f32 1.0, %v3109_v41 }
0x13c2   :  { %3110 = vrcp.f32 %v1501_v3 }
0x13cf   :  { %v3111_v8 = vpop.eup %3110 }
0x13d0   :  { %v1504_v9 = vmul.f32 %v3111_v8, %v1495_v7  ;;  %v1507_v16 = vsub.f32 1.0, %v3111_v8  ;;  %v1513_v17 = vmul.f32 %v3111_v8, %v1417_v46  ;;  %v47_v8 = vld [vmem:[%s4156_s0 + $0x60] sm:$0xff] }
0x13d2   :  { %v1505_v12 = vadd.f32 %v1504_v9, %v1420_v11 }
0x13d4   :  { %3112 = vtanh.f32 %v1505_v12 }
0x13e1   :  { %v3113_v14 = vpop.eup %3112 }
0x13e2   :  { %1509 = vrot.lane.b32.xlu0 %v3113_v14, %s3213_s9 }
0x13e6   :  { %108 = vperm.xlu0 %3046, %v46_v15  }
0x1454   :  { %v1510_v42 = vpop.permute.xlu0 %1509 }
0x1455   :  { %v1512_v19 = vmul.f32 %v1510_v42, %v1507_v16  ;;  %v2822_v16 = vld [vmem:[%s4156_s0 + $0xe0] sm:$0xff] }
0x1457   :  { %v1514_v43 = vadd.f32 %v1513_v17, %v1512_v19 }
0x1459   :  { %1519 = vrot.lane.b32.xlu1 %v1514_v43, %s3213_s9 }
0x145d   :  { %248 = vperm.xlu1 %3047, %v2821_v20  }
0x1461   :  { %v109_v2 = vpop.permute.xlu0 %108 }
0x1462   :  { %v164_v47 = vmul.f32 %v3398_v27, %v109_v2  ;;  %v165_v48 = vmul.f32 %v3401_v28, %v109_v2 }
0x14cb   :  { %v1520_v44 = vpop.permute.xlu1 %1519 }
0x14cc   :  { %2848 = vmatmul.mubr.msk.f32.vlgmr.msra.gmra.mxu1 %vm390_vm0, %v1520_v44 }
0x14cd   :  { %1734 = vmatpush1.msra.mxu1 %v3693_v58  ;;  %1781 = vmatprep.mubr.f32.mxu1 %v3211_v0 }
0x14ce   :  { %1735 = vmatprep.subr.mxu1 %v3700_v59 }
0x14cf   :  { %1736 = vmatpush1.msra.mxu1 %v3706_v60 }
0x14d0   :  { %1737 = vmatprep.subr.mxu1 %v3712_v61 }
0x14d1   :  { %1738 = vmatpush1.msra.mxu1 %v3718_v62 }
0x14d2   :  { %1739 = vmatprep.subr.mxu1 %v3724_v63 }
0x14d3   :  { %1740 = vmatpush1.msra.mxu1 %v3730_v1 }
0x14d4   :  { %1741 = vmatprep.subr.mxu1 %v3736_v10 }
0x14d5   :  { %1742 = vmatpush1.msra.mxu1 %v3742_v13 }
0x14d6   :  { %1743 = vmatprep.subr.mxu1 %v3748_v25 }
0x14d7   :  { %1744 = vmatpush1.msra.mxu1 %v3754_v26 }
0x14d8   :  { %v249_v46 = vpop.permute.xlu1 %248  ;;  %1745 = vmatprep.subr.mxu1 %v3760_v32 }
0x14d9   :  { %v304_v49 = vmul.f32 %v3404_v30, %v249_v46  ;;  %v305_v50 = vmul.f32 %v3407_v31, %v249_v46  ;;  %1746 = vmatpush1.msra.mxu1 %v3770_v37 }
0x14da   :  { %1747 = vmatprep.subr.mxu1 %v3776_v40 }
0x14db   :  { %v336_v51 = vadd.f32 %v304_v49, %v164_v47  ;;  %v337_v53 = vadd.f32 %v305_v50, %v165_v48  ;;  %1748 = vmatpush1.msra.mxu1 %v3782_v4 }
0x14dc   :  { %1927 = vmatprep.subr.mxu1 %v3788_v5 }
0x14dd   :  { %v379_v54 = vadd.f32 %v3417_v38, %v336_v51  ;;  %v380_v55 = vadd.f32 %v3420_v39, %v337_v53 }
0x14df   :  { %413 = vst.msk [vmem:[#allocation2 + $0xb8] sm:$0xff] %vm390_vm0, %v380_v55 }
0x14e6   :  { %v1517_v3 = vld [vmem:[#allocation2 + $0xb8] sm:$0xff] }
0x158c   :  { %v1589_v56 = vpop.f32.mrf.mxu1 }
0x158d   :  { %v1590_v57 = vadd.f32 %v1589_v56, %v3429_v45 }
0x158e   :  { %v1591_v35 = vpop.f32.mrf.mxu1 }
0x158f   :  { %v1594_v18 = vadd.f32 %v1590_v57, %v379_v54  ;;  %v1592_v36 = vadd.f32 %v1591_v35, %v3433_v52 }
0x1591   :  { %v2849_v29 = vmul.f32 -1.442695, %v1594_v18 }
0x1593   :  { %3114 = vpow2.f32 %v2849_v29 }
0x15a0   :  { %v3115_v33 = vpop.eup %3114 }
0x15a1   :  { %v1598_v34 = vadd.f32 1.0, %v3115_v33 }
0x15a3   :  { %3116 = vrcp.f32 %v1598_v34 }
0x15b0   :  { %v3117_v41 = vpop.eup %3116 }
0x15b1   :  { %v1601_v5 = vmul.f32 %v3117_v41, %v1592_v36  ;;  %v1604_v9 = vsub.f32 1.0, %v3117_v41  ;;  %v1610_v12 = vmul.f32 %v3117_v41, %v1514_v43  ;;  %v48_v41 = vld [vmem:[%s4156_s0 + $0x68] sm:$0xff] }
0x15b3   :  { %v1602_v6 = vadd.f32 %v1601_v5, %v1517_v3 }
0x15b5   :  { %3118 = vtanh.f32 %v1602_v6 }
0x15c2   :  { %v3119_v7 = vpop.eup %3118 }
0x15c3   :  { %1606 = vrot.lane.b32.xlu0 %v3119_v7, %s3213_s9 }
0x15c7   :  { %113 = vperm.xlu0 %3046, %v47_v8  }
0x1635   :  { %v1607_v11 = vpop.permute.xlu0 %1606 }
0x1636   :  { %v1609_v14 = vmul.f32 %v1607_v11, %v1604_v9  ;;  %v2823_v9 = vld [vmem:[%s4156_s0 + $0xe8] sm:$0xff] }
0x1638   :  { %v1611_v15 = vadd.f32 %v1610_v12, %v1609_v14 }
0x163a   :  { %1616 = vrot.lane.b32.xlu1 %v1611_v15, %s3213_s9 }
0x163e   :  { %253 = vperm.xlu1 %3047, %v2822_v16  }
0x1642   :  { %v114_v17 = vpop.permute.xlu0 %113 }
0x1643   :  { %v166_v43 = vmul.f32 %v3398_v27, %v114_v17  ;;  %v167_v20 = vmul.f32 %v3401_v28, %v114_v17 }
0x16ac   :  { %v1617_v42 = vpop.permute.xlu1 %1616 }
0x16ad   :  { %2850 = vmatmul.mubr.msk.f32.vlgmr.msra.gmra.mxu0 %vm390_vm0, %v1617_v42 }
0x16ae   :  { %1831 = vmatpush1.msra.mxu0 %v3693_v58  ;;  %1878 = vmatprep.mubr.f32.mxu0 %v3211_v0 }
0x16af   :  { %1832 = vmatprep.subr.mxu0 %v3700_v59 }
0x16b0   :  { %1833 = vmatpush1.msra.mxu0 %v3706_v60 }
0x16b1   :  { %1834 = vmatprep.subr.mxu0 %v3712_v61 }
0x16b2   :  { %1835 = vmatpush1.msra.mxu0 %v3718_v62 }
0x16b3   :  { %1836 = vmatprep.subr.mxu0 %v3724_v63 }
0x16b4   :  { %1837 = vmatpush1.msra.mxu0 %v3730_v1 }
0x16b5   :  { %1838 = vmatprep.subr.mxu0 %v3736_v10 }
0x16b6   :  { %1839 = vmatpush1.msra.mxu0 %v3742_v13 }
0x16b7   :  { %1840 = vmatprep.subr.mxu0 %v3748_v25 }
0x16b8   :  { %1841 = vmatpush1.msra.mxu0 %v3754_v26 }
0x16b9   :  { %v254_v19 = vpop.permute.xlu1 %253  ;;  %1842 = vmatprep.subr.mxu0 %v3760_v32 }
0x16ba   :  { %v306_v44 = vmul.f32 %v3404_v30, %v254_v19  ;;  %v307_v2 = vmul.f32 %v3407_v31, %v254_v19  ;;  %1843 = vmatpush1.msra.mxu0 %v3770_v37 }
0x16bb   :  { %1844 = vmatprep.subr.mxu0 %v3776_v40 }
0x16bc   :  { %v338_v46 = vadd.f32 %v306_v44, %v166_v43  ;;  %v339_v47 = vadd.f32 %v307_v2, %v167_v20  ;;  %1845 = vmatpush1.msra.mxu0 %v3782_v4  ;;  %v49_v20 = vld [vmem:[%s4156_s0 + $0x70] sm:$0xff] }
0x16bd   :  { %2936 = vmatprep.subr.mxu0 %v3211_v0 }
0x16be   :  { %v381_v48 = vadd.f32 %v3417_v38, %v338_v46  ;;  %v382_v49 = vadd.f32 %v3420_v39, %v339_v47 }
0x16c0   :  { %415 = vst.msk [vmem:[#allocation2 + $0xc8] sm:$0xff] %vm390_vm0, %v382_v49  ;;  %v2824_v49 = vld [vmem:[%s4156_s0 + $0xf0] sm:$0xff] }
0x16c7   :  { %v1614_v34 = vld [vmem:[#allocation2 + $0xc8] sm:$0xff] }
0x176d   :  { %v1686_v50 = vpop.f32.mrf.mxu0 }
0x176e   :  { %v1687_v51 = vadd.f32 %v1686_v50, %v3429_v45 }
0x176f   :  { %v1688_v57 = vpop.f32.mrf.mxu0 }
0x1770   :  { %v1691_v53 = vadd.f32 %v1687_v51, %v381_v48  ;;  %v1689_v18 = vadd.f32 %v1688_v57, %v3433_v52 }
0x1772   :  { %v2851_v54 = vmul.f32 -1.442695, %v1691_v53 }
0x1774   :  { %3120 = vpow2.f32 %v2851_v54 }
0x1781   :  { %v3121_v55 = vpop.eup %3120 }
0x1782   :  { %v1695_v56 = vadd.f32 1.0, %v3121_v55 }
0x1784   :  { %3122 = vrcp.f32 %v1695_v56 }
0x1791   :  { %v3123_v29 = vpop.eup %3122 }
0x1792   :  { %v1698_v33 = vmul.f32 %v3123_v29, %v1689_v18  ;;  %v1701_v5 = vsub.f32 1.0, %v3123_v29  ;;  %v1707_v6 = vmul.f32 %v3123_v29, %v1611_v15 }
0x1794   :  { %v1699_v35 = vadd.f32 %v1698_v33, %v1614_v34 }
0x1796   :  { %3124 = vtanh.f32 %v1699_v35 }
0x17a3   :  { %v3125_v36 = vpop.eup %3124 }
0x17a4   :  { %1703 = vrot.lane.b32.xlu0 %v3125_v36, %s3213_s9 }
0x17a8   :  { %118 = vperm.xlu0 %3046, %v48_v41  }
0x1816   :  { %v1704_v3 = vpop.permute.xlu0 %1703 }
0x1817   :  { %v1706_v7 = vmul.f32 %v1704_v3, %v1701_v5 }
0x1819   :  { %v1708_v8 = vadd.f32 %v1707_v6, %v1706_v7 }
0x181b   :  { %1713 = vrot.lane.b32.xlu1 %v1708_v8, %s3213_s9 }
0x181f   :  { %258 = vperm.xlu1 %3047, %v2823_v9  }
0x1823   :  { %v119_v12 = vpop.permute.xlu0 %118 }
0x188d   :  { %v1714_v11 = vpop.permute.xlu1 %1713 }
0x188e   :  { %2852 = vmatmul.mubr.msk.f32.vlgmr.msra.gmra.mxu1 %vm390_vm0, %v1714_v11 }
0x188f   :  { %1928 = vmatpush1.msra.mxu1 %v3693_v58  ;;  %1975 = vmatprep.mubr.f32.mxu1 %v3211_v0 }
0x1890   :  { %1929 = vmatprep.subr.mxu1 %v3700_v59  ;;  %v168_v59 = vmul.f32 %v3398_v27, %v119_v12 }
0x1891   :  { %1930 = vmatpush1.msra.mxu1 %v3706_v60  ;;  %v169_v60 = vmul.f32 %v3401_v28, %v119_v12 }
0x1892   :  { %1931 = vmatprep.subr.mxu1 %v3712_v61 }
0x1893   :  { %1932 = vmatpush1.msra.mxu1 %v3718_v62 }
0x1894   :  { %1933 = vmatprep.subr.mxu1 %v3724_v63 }
0x1895   :  { %1934 = vmatpush1.msra.mxu1 %v3730_v1 }
0x1896   :  { %1935 = vmatprep.subr.mxu1 %v3736_v10 }
0x1897   :  { %1936 = vmatpush1.msra.mxu1 %v3742_v13 }
0x1898   :  { %1937 = vmatprep.subr.mxu1 %v3748_v25 }
0x1899   :  { %1938 = vmatpush1.msra.mxu1 %v3754_v26 }
0x189a   :  { %v259_v58 = vpop.permute.xlu1 %258  ;;  %1939 = vmatprep.subr.mxu1 %v3760_v32 }
0x189b   :  { %v308_v61 = vmul.f32 %v3404_v30, %v259_v58  ;;  %v309_v62 = vmul.f32 %v3407_v31, %v259_v58  ;;  %1940 = vmatpush1.msra.mxu1 %v3770_v37 }
0x189c   :  { %1941 = vmatprep.subr.mxu1 %v3776_v40 }
0x189d   :  { %v340_v63 = vadd.f32 %v308_v61, %v168_v59  ;;  %v341_v1 = vadd.f32 %v309_v62, %v169_v60  ;;  %1942 = vmatpush1.msra.mxu1 %v3782_v4  ;;  %v50_v60 = vld [vmem:[%s4156_s0 + $0x78] sm:$0xff] }
0x189e   :  { %2926 = vmatprep.subr.mxu1 %v3211_v0 }
0x189f   :  { %v383_v10 = vadd.f32 %v3417_v38, %v340_v63  ;;  %v384_v13 = vadd.f32 %v3420_v39, %v341_v1 }
0x18a1   :  { %417 = vst.msk [vmem:[#allocation2 + $0xd8] sm:$0xff] %vm390_vm0, %v384_v13  ;;  %v2825_v13 = vld [vmem:[%s4156_s0 + $0xf8] sm:$0xff] }
0x18a8   :  { %v1711_v17 = vld [vmem:[#allocation2 + $0xd8] sm:$0xff] }
0x194e   :  { %v1783_v25 = vpop.f32.mrf.mxu1 }
0x194f   :  { %v1784_v26 = vadd.f32 %v1783_v25, %v3429_v45 }
0x1950   :  { %v1785_v15 = vpop.f32.mrf.mxu1 }
0x1951   :  { %v1788_v32 = vadd.f32 %v1784_v26, %v383_v10  ;;  %v1786_v4 = vadd.f32 %v1785_v15, %v3433_v52 }
0x1953   :  { %v2853_v14 = vmul.f32 -1.442695, %v1788_v32 }
0x1955   :  { %3126 = vpow2.f32 %v2853_v14 }
0x1962   :  { %v3127_v37 = vpop.eup %3126 }
0x1963   :  { %v1792_v40 = vadd.f32 1.0, %v3127_v37 }
0x1965   :  { %3128 = vrcp.f32 %v1792_v40 }
0x1972   :  { %v3129_v16 = vpop.eup %3128 }
0x1973   :  { %v1795_v42 = vmul.f32 %v3129_v16, %v1786_v4  ;;  %v1798_v44 = vsub.f32 1.0, %v3129_v16  ;;  %v1804_v46 = vmul.f32 %v3129_v16, %v1708_v8 }
0x1975   :  { %v1796_v19 = vadd.f32 %v1795_v42, %v1711_v17 }
0x1977   :  { %3130 = vtanh.f32 %v1796_v19 }
0x1984   :  { %v3131_v43 = vpop.eup %3130 }
0x1985   :  { %1800 = vrot.lane.b32.xlu0 %v3131_v43, %s3213_s9 }
0x1989   :  { %123 = vperm.xlu0 %3046, %v49_v20  }
0x19f7   :  { %v1801_v2 = vpop.permute.xlu0 %1800 }
0x19f8   :  { %v1803_v47 = vmul.f32 %v1801_v2, %v1798_v44 }
0x19fa   :  { %v1805_v48 = vadd.f32 %v1804_v46, %v1803_v47  ;;  %v2003_v47 = vand.u32 127, %v132_v21 }
0x19fc   :  { %1810 = vrot.lane.b32.xlu1 %v1805_v48, %s3213_s9 }
0x1a00   :  { %263 = vperm.xlu1 %3047, %v2824_v49  }
0x1a04   :  { %v124_v51 = vpop.permute.xlu0 %123 }
0x1a05   :  { %v170_v54 = vmul.f32 %v3398_v27, %v124_v51  ;;  %v171_v55 = vmul.f32 %v3401_v28, %v124_v51  ;;  %v2111_v51 = vld [vmem:[%s4157_s1 + $0xf8] sm:$0xff] }
0x1a6e   :  { %v1811_v50 = vpop.permute.xlu1 %1810 }
0x1a6f   :  { %2854 = vmatmul.mubr.msk.f32.vlgmr.msra.gmra.mxu0 %vm390_vm0, %v1811_v50  ;;  %v2013_v50 = vadd.s32 1, %v2003_v47 }
0x1a70   :  { %2938 = vmatprep.mubr.msk.f32.mxu0 %vm3214_vm2, %v3211_v0 }
0x1a71   :  { %v2014_v21 = vmul.u32 4, %v2013_v50  ;;  %v2534_v50 = vld [vmem:[#allocation3 + $0x78] sm:$0xff] }
0x1a73   :  { %vm2015_vm7 = vcmp.lt.s32.totalorder %v3383_v22, %v2014_v21  ;;  %v2533_v21 = vld [vmem:[#allocation3 + $0x70] sm:$0xff] }
0x1a7b   :  { %v264_v53 = vpop.permute.xlu1 %263 }
0x1a7c   :  { %v310_v56 = vmul.f32 %v3404_v30, %v264_v53  ;;  %v311_v57 = vmul.f32 %v3407_v31, %v264_v53 }
0x1a7e   :  { %v342_v18 = vadd.f32 %v310_v56, %v170_v54  ;;  %v343_v29 = vadd.f32 %v311_v57, %v171_v55  ;;  %v2110_v54 = vld [vmem:[%s4157_s1 + $0xf0] sm:$0xff]  ;;  %v2109_v57 = vld [vmem:[%s4157_s1 + $0xe8] sm:$0xff] }
0x1a80   :  { %v385_v33 = vadd.f32 %v3417_v38, %v342_v18  ;;  %v386_v34 = vadd.f32 %v3420_v39, %v343_v29  ;;  %v2107_v18 = vld [vmem:[%s4157_s1 + $0xd8] sm:$0xff]  ;;  %v2106_v29 = vld [vmem:[%s4157_s1 + $0xd0] sm:$0xff] }
0x1a82   :  { %419 = vst.msk [vmem:[#allocation2 + $0xe8] sm:$0xff] %vm390_vm0, %v386_v34  ;;  %v2104_v34 = vld [vmem:[%s4157_s1 + $0xc0] sm:$0xff] }
0x1a89   :  { %v1808_v12 = vld [vmem:[#allocation2 + $0xe8] sm:$0xff] }
0x1b2f   :  { %v1880_v35 = vpop.f32.mrf.mxu0 }
0x1b30   :  { %v1881_v36 = vadd.f32 %v1880_v35, %v3429_v45  ;;  %v2103_v35 = vld [vmem:[%s4157_s1 + $0xb8] sm:$0xff] }
0x1b31   :  { %v1882_v7 = vpop.f32.mrf.mxu0 }
0x1b32   :  { %v1885_v41 = vadd.f32 %v1881_v36, %v385_v33  ;;  %v1883_v8 = vadd.f32 %v1882_v7, %v3433_v52  ;;  %v2105_v33 = vld [vmem:[%s4157_s1 + $0xc8] sm:$0xff]  ;;  %v2102_v36 = vld [vmem:[%s4157_s1 + $0xb0] sm:$0xff] }
0x1b33   :  { %v2097_v7 = vld [vmem:[%s4157_s1 + $0x88] sm:$0xff] }
0x1b34   :  { %v2855_v5 = vmul.f32 -1.442695, %v1885_v41  ;;  %v2101_v41 = vld [vmem:[%s4157_s1 + $0xa8] sm:$0xff] }
0x1b36   :  { %3132 = vpow2.f32 %v2855_v5  ;;  %v2100_v5 = vld [vmem:[%s4157_s1 + $0xa0] sm:$0xff] }
0x1b43   :  { %v3133_v3 = vpop.eup %3132 }
0x1b44   :  { %v1889_v6 = vadd.f32 1.0, %v3133_v3  ;;  %v2099_v3 = vld [vmem:[%s4157_s1 + $0x98] sm:$0xff] }
0x1b46   :  { %3134 = vrcp.f32 %v1889_v6  ;;  %v2098_v6 = vld [vmem:[%s4157_s1 + $0x90] sm:$0xff] }
0x1b53   :  { %v3135_v9 = vpop.eup %3134 }
0x1b54   :  { %v1892_v11 = vmul.f32 %v3135_v9, %v1883_v8  ;;  %v1895_v61 = vsub.f32 1.0, %v3135_v9  ;;  %v1901_v63 = vmul.f32 %v3135_v9, %v1805_v48  ;;  %v2006_v48 = vadd.s32 1, %v3383_v22  ;;  %v2096_v8 = vld [vmem:[%s4157_s1 + $0x80] sm:$0xff] }
0x1b56   :  { %v1893_v58 = vadd.f32 %v1892_v11, %v1808_v12  ;;  %v2007_v49 = vmul.u32 4, %v2006_v48  ;;  %v2443_v48 = vld [vmem:[#allocation3 + $0x10] sm:$0xff] }
0x1b58   :  { %3136 = vtanh.f32 %v1893_v58  ;;  %vm2008_vm3 = vcmp.lt.s32.totalorder %v2003_v47, %v2007_v49  ;;  %v2442_v49 = vld [vmem:[#allocation3 + $0x8] sm:$0xff] }
0x1b65   :  { %v3137_v59 = vpop.eup %3136 }
0x1b66   :  { %1897 = vrot.lane.b32.xlu0 %v3137_v59, %s3213_s9 }
0x1b6a   :  { %128 = vperm.xlu0 %3046, %v50_v60  }
0x1bd8   :  { %v1898_v62 = vpop.permute.xlu0 %1897 }
0x1bd9   :  { %v1900_v1 = vmul.f32 %v1898_v62, %v1895_v61 }
0x1bdb   :  { %v3994_v10 = vadd.f32 %v1901_v63, %v1900_v1  ;;  %v2860_v63 = vld [vmem:[%s4157_s1 + $0x104] ss:$8 sm:$0x3] }
0x1bdc   :  { %v2118_v1 = vrot.slane %v2860_v63, %v3386_v23 }
0x1bdd   :  { %1907 = vrot.lane.b32.xlu1 %v3994_v10, %s3213_s9 }
0x1be1   :  { %268 = vperm.xlu1 %3047, %v2825_v13  }
0x1be5   :  { %v129_v26 = vpop.permute.xlu0 %128 }
0x1be6   :  { %v172_v14 = vmul.f32 %v3398_v27, %v129_v26  ;;  %v173_v37 = vmul.f32 %v3401_v28, %v129_v26 }
0x1c4f   :  { %v1908_v25 = vpop.permute.xlu1 %1907 }
0x1c50   :  { %2856 = vmatmul.mubr.msk.f32.vlgmr.msra.gmra.mxu1 %vm390_vm0, %v1908_v25 }
0x1c51   :  { %2928 = vmatprep.mubr.msk.f32.mxu1 %vm3214_vm2, %v3211_v0 }
0x1c5c   :  { %v269_v32 = vpop.permute.xlu1 %268 }
0x1c5d   :  { %v312_v40 = vmul.f32 %v3404_v30, %v269_v32  ;;  %v313_v15 = vmul.f32 %v3407_v31, %v269_v32 }
0x1c5f   :  { %v344_v4 = vadd.f32 %v312_v40, %v172_v14  ;;  %v345_v16 = vadd.f32 %v313_v15, %v173_v37 }
0x1c61   :  { %v387_v42 = vadd.f32 %v3417_v38, %v344_v4  ;;  %v388_v17 = vadd.f32 %v3420_v39, %v345_v16 }
0x1c63   :  { %421 = vst.msk [vmem:[#allocation2 + $0xf8] sm:$0xff] %vm390_vm0, %v388_v17 }
0x1c6a   :  { %v1905_v46 = vld [vmem:[#allocation2 + $0xf8] sm:$0xff] }
0x1d10   :  { %v1977_v19 = vpop.f32.mrf.mxu1 }
0x1d11   :  { %v1978_v43 = vadd.f32 %v1977_v19, %v3429_v45  ;;  %v2004_v45 = vmul.u32 4, %v3383_v22 }
0x1d12   :  { %v1979_v30 = vpop.f32.mrf.mxu1 }
0x1d13   :  { %v1982_v20 = vadd.f32 %v1978_v43, %v387_v42  ;;  %v1980_v31 = vadd.f32 %v1979_v30, %v3433_v52  ;;  %vm2005_vm1 = vcmp.ge.s32.totalorder %v2003_v47, %v2004_v45  ;;  %v2011_v52 = vmul.u32 4, %v2003_v47  ;;  %v2445_v47 = vld [vmem:[#allocation3 + $0x20] sm:$0xff]  ;;  %v2444_v45 = vld [vmem:[#allocation3 + $0x18] sm:$0xff] }
0x1d14   :  { %vm2009_vm6 = vmand %vm2005_vm1, %vm2008_vm3 }
0x1d15   :  { %v2857_v44 = vmul.f32 -1.442695, %v1982_v20  ;;  %vm2012_vm5 = vcmp.ge.s32.totalorder %v3383_v22, %v2011_v52  ;;  %v4026_v53 = vsel %vm2009_vm6, 1.0, %v3211_v0  ;;  %v2108_v22 = vld [vmem:[%s4157_s1 + $0xe0] sm:$0xff]  ;;  %s3215_s1 = smov [#allocation6]  }
0x1d16   :  { %2927 = vmatpush3.msk.msra.mxu1 %vm2022_vm4, %v4026_v53  ;;  %vm2016_vm9 = vmand %vm2012_vm5, %vm2015_vm7  ;;  %v2367_v30 = vmul.f32 0.25, %v4026_v53  ;;  %v2441_v52 = vld [vmem:[#allocation3] sm:$0xff] }
0x1d17   :  { %3138 = vpow2.f32 %v2857_v44  ;;  %v2017_v56 = vsel %vm2016_vm9, 1.0, %v3211_v0  ;;  %2146 = vmatprep.subr.mxu1 %v2111_v51  ;;  %v2532_v51 = vld [vmem:[#allocation3 + $0x68] sm:$0xff]  ;;  %v2531_v53 = vld [vmem:[#allocation3 + $0x60] sm:$0xff] }
0x1d18   :  { %2929 = vmatmul.mubr.msk.f32.vlgmr.msra.gmra.mxu1 %vm2018_vm8, %v2017_v56 }
0x1d19   :  { %2147 = vmatpush1.msra.mxu1 %v2110_v54  ;;  %2194 = vmatprep.mubr.f32.mxu1 %v3211_v0  ;;  %v2530_v54 = vld [vmem:[#allocation3 + $0x58] sm:$0xff] }
0x1d1a   :  { %2148 = vmatprep.subr.mxu1 %v2109_v57 }
0x1d1b   :  { %2149 = vmatpush1.msra.mxu1 %v2108_v22  ;;  %v2528_v22 = vld [vmem:[#allocation3 + $0x48] sm:$0xff] }
0x1d1c   :  { %2150 = vmatprep.subr.mxu1 %v2107_v18  ;;  %v2527_v18 = vld [vmem:[#allocation3 + $0x40] sm:$0xff] }
0x1d1d   :  { %2151 = vmatpush1.msra.mxu1 %v2106_v29  ;;  %v2628_v29 = vld [vmem:[#allocation3 + $0xf8] sm:$0xff] }
0x1d1e   :  { %2152 = vmatprep.subr.mxu1 %v2105_v33  ;;  %v2627_v33 = vld [vmem:[#allocation3 + $0xf0] sm:$0xff] }
0x1d1f   :  { %2153 = vmatpush1.msra.mxu1 %v2104_v34  ;;  %v2626_v34 = vld [vmem:[#allocation3 + $0xe8] sm:$0xff] }
0x1d20   :  { %2154 = vmatprep.subr.mxu1 %v2103_v35  ;;  %v2625_v35 = vld [vmem:[#allocation3 + $0xe0] sm:$0xff] }
0x1d21   :  { %2155 = vmatpush1.msra.mxu1 %v2102_v36  ;;  %v2624_v36 = vld [vmem:[#allocation3 + $0xd8] sm:$0xff] }
0x1d22   :  { %2156 = vmatprep.subr.mxu1 %v2101_v41  ;;  %v2623_v41 = vld [vmem:[#allocation3 + $0xd0] sm:$0xff] }
0x1d23   :  { %2157 = vmatpush1.msra.mxu1 %v2100_v5  ;;  %v2622_v5 = vld [vmem:[#allocation3 + $0xc8] sm:$0xff] }
0x1d24   :  { %v3139_v27 = vpop.eup %3138  ;;  %2158 = vmatprep.subr.mxu1 %v2099_v3  ;;  %v2621_v3 = vld [vmem:[#allocation3 + $0xc0] sm:$0xff] }
0x1d25   :  { %v1986_v28 = vadd.f32 1.0, %v3139_v27  ;;  %2159 = vmatpush1.msra.mxu1 %v2098_v6  ;;  %v2620_v6 = vld [vmem:[#allocation3 + $0xb8] sm:$0xff] }
0x1d26   :  { %2160 = vmatprep.subr.mxu1 %v2097_v7  ;;  %v2619_v7 = vld [vmem:[#allocation3 + $0xb0] sm:$0xff] }
0x1d27   :  { %3140 = vrcp.f32 %v1986_v28  ;;  %2161 = vmatpush1.msra.mxu1 %v2096_v8  ;;  %v2618_v8 = vld [vmem:[#allocation3 + $0xa8] sm:$0xff] }
0x1d28   :  { %2931 = vmatprep.subr.mxu1 %v3211_v0 }
0x1d34   :  { %v4011_v2 = vpop.eup %3140 }
0x1d35   :  { %v1989_v38 = vmul.f32 %v4011_v2, %v1980_v31  ;;  %v1992_v9 = vsub.f32 1.0, %v4011_v2  ;;  %v1998_v12 = vmul.f32 %v4011_v2, %v3994_v10  ;;  %v2122_v10 = vrot.slane %v2860_v63, %v3389_v24  ;;  %v2448_v2 = vld [vmem:[#allocation3 + $0x38] sm:$0xff]  ;;  %v2613_v63 = vld [vmem:[#allocation3 + $0x80] sm:$0xff] }
0x1d37   :  { %v1990_v39 = vadd.f32 %v1989_v38, %v1905_v46  ;;  %v2447_v46 = vld [vmem:[#allocation3 + $0x30] sm:$0xff] }
0x1d39   :  { %3142 = vtanh.f32 %v1990_v39  ;;  %v2446_v39 = vld [vmem:[#allocation3 + $0x28] sm:$0xff] }
0x1d46   :  { %v3143_v55 = vpop.eup %3142 }
0x1d47   :  { %1994 = vrot.lane.b32.xlu0 %v3143_v55, %s3213_s9  ;;  %v2529_v55 = vld [vmem:[#allocation3 + $0x50] sm:$0xff] }
0x1db9   :  { %v1995_v11 = vpop.permute.xlu0 %1994 }
0x1dba   :  { %v1997_v58 = vmul.f32 %v1995_v11, %v1992_v9  ;;  %v2617_v9 = vld [vmem:[#allocation3 + $0xa0] sm:$0xff]  ;;  %v2616_v11 = vld [vmem:[#allocation3 + $0x98] sm:$0xff] }
0x1dbc   :  { %v1999_v59 = vadd.f32 %v1998_v12, %v1997_v58  ;;  %v2615_v12 = vld [vmem:[#allocation3 + $0x90] sm:$0xff]  ;;  %v2867_v58 = vld [vmem:[#allocation3 + $0x140] ss:$0 sm:$0xff] }
0x1dbe   :  { %2126 = vrot.lane.b32.xlu1 %v1999_v59, %s3213_s9 }
0x1dd8   :  { %v2092_v60 = vpop.f32.mrf.mxu1 }
0x1dd9   :  { %v2862_v23 = vadd.f32 -1.0, %v2092_v60 }
0x1dda   :  { %v2930_v61 = vpop.f32.mrf.mxu1 }
0x1ddb   :  { %v2203_v24 = vmul.f32 1e+09, %v2862_v23 }
0x1e30   :  { %v2127_v62 = vpop.permute.xlu1 %2126 }
0x1e31   :  { %2861 = vmatmul.mubr.msk.f32.vlgmr.msra.gmra.mxu1 %vm390_vm0, %v2127_v62  ;;  %v2614_v62 = vld [vmem:[#allocation3 + $0x88] sm:$0xff] }
0x1e32   :  { %2933 = vmatprep.mubr.msk.f32.mxu1 %vm3214_vm2, %v3211_v0 }
0x1ef1   :  { %v2196_v13 = vpop.f32.mrf.mxu1 }
0x1ef2   :  { %v2197_v25 = vadd.f32 %v2196_v13, %v2118_v1  ;;  %v2711_v1 = vld [vmem:[#allocation3 + $0x138] sm:$0xff]  ;;  %v2709_v13 = vld [vmem:[#allocation3 + $0x128] sm:$0xff] }
0x1ef3   :  { %v2198_v26 = vpop.f32.mrf.mxu1 }
0x1ef4   :  { %v2199_v32 = vadd.f32 %v2198_v26, %v2122_v10  ;;  %2205 = vrot.lane.b32.xlu0 %v2197_v25, %s3213_s9  ;;  %v2201_v37 = vmul.f32 0.125, %v2197_v25  ;;  %v2710_v10 = vld [vmem:[#allocation3 + $0x130] sm:$0xff]  ;;  %v2708_v25 = vld [vmem:[#allocation3 + $0x120] sm:$0xff]  ;;  %v2707_v26 = vld [vmem:[#allocation3 + $0x118] sm:$0xff]  ;;  %s2798_s9 = sshll.u32 %s3215_s1, 4  ;;  %s2799_s9 = int_to_ptr.vmem [resolvable:$true] %s2798_s9 }
0x1ef5   :  { %s3184_s23 = scalar_lea.vmem %s2799_s9, 32  ;;  %p3189_p6 = scmp.lt.s32.totalorder %s2799_s9, %s2799_s9 }
0x1ef6   :  { %2937 = vmatpush3.msra.mxu0 %v2199_v32  ;;  %v2706_v32 = vld [vmem:[#allocation3 + $0x110] sm:$0xff]  ;;  %p3185_p5 = scmp.ne.s32.totalorder %s2799_s9, %s3184_s23  ;;  %p3190_p7 = scmp.lt.s32.totalorder %s3184_s23, %s3184_s23 }
0x1ef7   :  { %2941 = vmatprep.subr.mxu0 %v3211_v0 }
0x1ef8   :  { %p3191_p8 = por %p3190_p7, %p3189_p6 }
0x1efa   :  { %p3192_p9 = pnand %p3191_p8, %p3185_p5 }
0x1f66   :  { %v2206_v14 = vpop.permute.xlu0 %2205 }
0x1f67   :  { %2932 = vmatpush3.xpose.msk.msra.mxu1 %vm390_vm0, %v2206_v14  ;;  %v2869_v14 = vld [vmem:[#allocation3 + $0x141] ss:$0 sm:$0xff] }
0x1f68   :  { %2965 = vmatprep.subr.mxu1 %v3211_v0 }
0x1f6a   :  { %2934 = vmatmul.mubr.msk.f32.vlgmr.msra.gmra.mxu1 %vm390_vm0, %v2201_v37 }
0x1f6b   :  { %2981 = vmatprep.mubr.msk.f32.mxu1 %vm3214_vm2, %v3211_v0  ;;  %2966 = vmatpush3.msra.mxu1 %v2534_v50 }
0x1f6c   :  { %2967 = vmatprep.subr.mxu1 %v3211_v0 }
0x1f6d   :  { %2968 = vmatpush3.msra.mxu1 %v2533_v21 }
0x1f6e   :  { %2969 = vmatprep.subr.mxu1 %v3211_v0 }
0x1f6f   :  { %2970 = vmatpush3.msra.mxu1 %v2532_v51 }
0x1f70   :  { %2971 = vmatprep.subr.mxu1 %v3211_v0 }
0x1f71   :  { %2972 = vmatpush3.msra.mxu1 %v2531_v53 }
0x1f72   :  { %2973 = vmatprep.subr.mxu1 %v3211_v0 }
0x1f73   :  { %2974 = vmatpush3.msra.mxu1 %v2530_v54 }
0x1f74   :  { %2975 = vmatprep.subr.mxu1 %v3211_v0 }
0x1f75   :  { %2976 = vmatpush3.msra.mxu1 %v2529_v55 }
0x1f76   :  { %2977 = vmatprep.subr.mxu1 %v3211_v0 }
0x1f77   :  { %2978 = vmatpush3.msra.mxu1 %v2528_v22 }
0x1f78   :  { %2979 = vmatprep.subr.mxu1 %v3211_v0 }
0x1f79   :  { %2980 = vmatpush3.msra.mxu1 %v2527_v18 }
0x1f7a   :  { %3019 = vmatprep.subr.mxu1 %v3211_v0 }
0x202a   :  { %v2278_v40 = vpop.f32.mrf.mxu1 }
0x202b   :  { %v2279_v15 = vadd.f32 %v2278_v40, %v2203_v24  ;;  %v2705_v40 = vld [vmem:[#allocation3 + $0x108] sm:$0xff] }
0x202c   :  { %v2935_v4 = vpop.f32.mrf.mxu1 }
0x202d   :  { %v2283_v16 = vsel %vm2282_vm10, %v2279_v15, -inf  ;;  %v2871_v4 = vld [vmem:[#allocation3 + $0x142] ss:$0 sm:$0xff] }
0x202e   :  { %2284 = vmax.xlane.f32.xlu1 %v2283_v16 }
0x20b7   :  { %v2285_v42 = vpop.xlane.xlu1 %2284 }
0x20b8   :  { %v2286_v17 = vsub.f32 %v2279_v15, %v2285_v42  ;;  %v2704_v15 = vld [vmem:[#allocation3 + $0x100] sm:$0xff] }
0x20ba   :  { %v2287_v19 = vmul.f32 1.442695, %v2286_v17 }
0x20bc   :  { %3144 = vpow2.f32 %v2287_v19  ;;  %v2872_v19 = vld [vmem:[#allocation3 + $0x143] ss:$0 sm:$0xff] }
0x20c9   :  { %v3145_v43 = vpop.eup %3144 }
0x20ca   :  { %v2289_v20 = vsel %vm2282_vm10, %v3145_v43, 0.0 }
0x20cb   :  { %2290 = vadd.xlane.f32.xlu0 %v2289_v20 }
0x2154   :  { %v2291_v44 = vpop.xlane.xlu0 %2290 }
0x2155   :  { %3146 = vrcp.f32 %v2291_v44 }
0x2162   :  { %v3147_v27 = vpop.eup %3146 }
0x2163   :  { %v2293_v28 = vmul.f32 %v3147_v27, %v3145_v43 }
0x2165   :  { %2939 = vmatmul.mubr.msk.f32.vlgmr.msra.gmra.mxu0 %vm2282_vm10, %v2293_v28 }
0x2166   :  { %2943 = vmatprep.mubr.msk.f32.mxu0 %vm3214_vm2, %v3211_v0 }
0x2225   :  { %v2363_v31 = vpop.f32.mrf.mxu0 }
0x2226   :  { %2942 = vmatpush3.msra.mxu0 %v2363_v31 }
0x2227   :  { %v2940_v38 = vpop.f32.mrf.mxu0  ;;  %2944 = vmatmul.mubr.msk.f32.vlgmr.msra.gmra.mxu0 %vm2282_vm10, %v2367_v30  ;;  %2946 = vmatprep.subr.mxu0 %v3211_v0 }
0x2228   :  { %2947 = vmatpush3.msra.mxu0 %v2448_v2  ;;  %2962 = vmatprep.mubr.msk.f32.mxu0 %vm3214_vm2, %v3211_v0 }
0x2229   :  { %2948 = vmatprep.subr.mxu0 %v3211_v0 }
0x222a   :  { %2949 = vmatpush3.msra.mxu0 %v2447_v46 }
0x222b   :  { %2950 = vmatprep.subr.mxu0 %v3211_v0 }
0x222c   :  { %2951 = vmatpush3.msra.mxu0 %v2446_v39 }
0x222d   :  { %2952 = vmatprep.subr.mxu0 %v3211_v0 }
0x222e   :  { %2953 = vmatpush3.msra.mxu0 %v2445_v47 }
0x222f   :  { %2954 = vmatprep.subr.mxu0 %v3211_v0 }
0x2230   :  { %2955 = vmatpush3.msra.mxu0 %v2444_v45 }
0x2231   :  { %2956 = vmatprep.subr.mxu0 %v3211_v0 }
0x2232   :  { %2957 = vmatpush3.msra.mxu0 %v2443_v48 }
0x2233   :  { %2958 = vmatprep.subr.mxu0 %v3211_v0 }
0x2234   :  { %2959 = vmatpush3.msra.mxu0 %v2442_v49 }
0x2235   :  { %2960 = vmatprep.subr.mxu0 %v3211_v0 }
0x2236   :  { %2961 = vmatpush3.msra.mxu0 %v2441_v52 }
0x2237   :  { %2984 = vmatprep.subr.mxu0 %v3211_v0 }
0x22e7   :  { %v2437_v56 = vpop.f32.mrf.mxu0 }
0x22e8   :  { %2963 = vmatmul.mubr.msk.f32.vlgmr.msra.gmra.mxu0 %vm390_vm0, %v2437_v56 }
0x22e9   :  { %v2945_v57 = vpop.f32.mrf.mxu0  ;;  %3016 = vmatprep.mubr.msk.f32.mxu0 %vm3214_vm2, %v3211_v0  ;;  %2985 = vmatpush3.msra.mxu0 %v2628_v29 }
0x22ea   :  { %2986 = vmatprep.subr.mxu0 %v3211_v0 }
0x22eb   :  { %2987 = vmatpush3.msra.mxu0 %v2627_v33 }
0x22ec   :  { %2988 = vmatprep.subr.mxu0 %v3211_v0 }
0x22ed   :  { %2989 = vmatpush3.msra.mxu0 %v2626_v34 }
0x22ee   :  { %2990 = vmatprep.subr.mxu0 %v3211_v0 }
0x22ef   :  { %2991 = vmatpush3.msra.mxu0 %v2625_v35 }
0x22f0   :  { %2992 = vmatprep.subr.mxu0 %v3211_v0 }
0x22f1   :  { %2993 = vmatpush3.msra.mxu0 %v2624_v36 }
0x22f2   :  { %2994 = vmatprep.subr.mxu0 %v3211_v0 }
0x22f3   :  { %2995 = vmatpush3.msra.mxu0 %v2623_v41 }
0x22f4   :  { %2996 = vmatprep.subr.mxu0 %v3211_v0 }
0x22f5   :  { %2997 = vmatpush3.msra.mxu0 %v2622_v5 }
0x22f6   :  { %2998 = vmatprep.subr.mxu0 %v3211_v0 }
0x22f7   :  { %2999 = vmatpush3.msra.mxu0 %v2621_v3 }
0x22f8   :  { %3000 = vmatprep.subr.mxu0 %v3211_v0 }
0x22f9   :  { %3001 = vmatpush3.msra.mxu0 %v2620_v6 }
0x22fa   :  { %3002 = vmatprep.subr.mxu0 %v3211_v0 }
0x22fb   :  { %3003 = vmatpush3.msra.mxu0 %v2619_v7 }
0x22fc   :  { %3004 = vmatprep.subr.mxu0 %v3211_v0 }
0x22fd   :  { %3005 = vmatpush3.msra.mxu0 %v2618_v8 }
0x22fe   :  { %3006 = vmatprep.subr.mxu0 %v3211_v0 }
0x22ff   :  { %3007 = vmatpush3.msra.mxu0 %v2617_v9 }
0x2300   :  { %3008 = vmatprep.subr.mxu0 %v3211_v0 }
0x2301   :  { %3009 = vmatpush3.msra.mxu0 %v2616_v11 }
0x2302   :  { %3010 = vmatprep.subr.mxu0 %v3211_v0 }
0x2303   :  { %3011 = vmatpush3.msra.mxu0 %v2615_v12 }
0x2304   :  { %3012 = vmatprep.subr.mxu0 %v3211_v0 }
0x2305   :  { %3013 = vmatpush3.msra.mxu0 %v2614_v62 }
0x2306   :  { %3014 = vmatprep.subr.mxu0 %v3211_v0 }
0x2307   :  { %3015 = vmatpush3.msra.mxu0 %v2613_v63 }
0x23a8   :  { %v2523_v59 = vpop.f32.mrf.mxu0 }
0x23a9   :  { %v2524_v60 = vadd.f32 %v2867_v58, %v2523_v59 }
0x23aa   :  { %v2964_v61 = vpop.f32.mrf.mxu0 }
0x23ab   :  { %2982 = vmatmul.mubr.msk.f32.vlgmr.msra.gmra.mxu1 %vm390_vm0, %v2524_v60 }
0x23ac   :  { %3035 = vmatprep.mubr.msk.f32.mxu1 %vm3214_vm2, %v3211_v0  ;;  %3020 = vmatpush3.msra.mxu1 %v2711_v1 }
0x23ad   :  { %3021 = vmatprep.subr.mxu1 %v3211_v0 }
0x23ae   :  { %3022 = vmatpush3.msra.mxu1 %v2710_v10 }
0x23af   :  { %3023 = vmatprep.subr.mxu1 %v3211_v0 }
0x23b0   :  { %3024 = vmatpush3.msra.mxu1 %v2709_v13 }
0x23b1   :  { %3025 = vmatprep.subr.mxu1 %v3211_v0 }
0x23b2   :  { %3026 = vmatpush3.msra.mxu1 %v2708_v25 }
0x23b3   :  { %3027 = vmatprep.subr.mxu1 %v3211_v0 }
0x23b4   :  { %3028 = vmatpush3.msra.mxu1 %v2707_v26 }
0x23b5   :  { %3029 = vmatprep.subr.mxu1 %v3211_v0 }
0x23b6   :  { %3030 = vmatpush3.msra.mxu1 %v2706_v32 }
0x23b7   :  { %3031 = vmatprep.subr.mxu1 %v3211_v0 }
0x23b8   :  { %3032 = vmatpush3.msra.mxu1 %v2705_v40 }
0x23b9   :  { %3033 = vmatprep.subr.mxu1 %v3211_v0 }
0x23ba   :  { %3034 = vmatpush3.msra.mxu1 %v2704_v15 }
0x246b   :  { %v2609_v37 = vpop.f32.mrf.mxu1 }
0x246c   :  { %v2610_v23 = vadd.f32 %v2869_v14, %v2609_v37 }
0x246d   :  { %v2983_v24 = vpop.f32.mrf.mxu1 }
0x246e   :  { %3017 = vmatmul.mubr.f32.vlgmr.msra.gmra.mxu0 %v2610_v23 }
0x252e   :  { %v2700_v16 = vpop.f32.mrf.mxu0 }
0x252f   :  { %v2701_v42 = vadd.f32 %v2871_v4, %v2700_v16 }
0x2530   :  { %v3018_v17 = vpop.f32.mrf.mxu0 }
0x2531   :  { %3036 = vmatmul.mubr.msk.f32.vlgmr.msra.gmra.mxu1 %vm390_vm0, %v2701_v42 }
0x25f1   :  { %v2786_v43 = vpop.f32.mrf.mxu1 }
0x25f2   :  { %v2787_v20 = vadd.f32 %v2872_v19, %v2786_v43 }
0x25f3   :  { %v3037_v44 = vpop.f32.mrf.mxu1 }
0x25f4   :  { %2791 = vst.msk [vmem:[#allocation6] sm:$0x3] %vm2790_vm11, %v2787_v20 }
0x25f5   :  { %3195 = shalt.err (!%p3192_p9)
}
0x25f6   :  { %2801 = dma.vmem_to_hbm [thread:$0]  %s2799_s9, 32, %s4159_s3, [#allocation5]  }
0x25f7   :  { %3206 = dma.done.wait [#allocation5], 32  }
0x25f8   :  { %3207 = vsyncadd [#allocation5], 4294967264 }
0x25f9   :  { %2805 = vsyncpa [#allocation4], 1 }
0x25fa   :  { %2806 = vsyncpa [#allocation5], 1 }

</bundles_post_ra>
